<compile_context>
chip_gen: v7x
topology: tpu7x:2x2x1
jax: 0.10.0
libtpu: 0.0.40
codegen_flags: <defaults>
</compile_context>

<pallas_src>
import functools

import jax
import jax.numpy as jnp
from jax import lax
from jax.experimental import pallas as pl
from jax.experimental.pallas import tpu as pltpu


def _sigmoid(x):
    # sigmoid(x) = 0.5 * (tanh(0.5 x) + 1): a single EUP push per vreg instead
    # of exp + divide; the gate nonlinearities are on the serial critical path.
    return 0.5 * jnp.tanh(0.5 * x) + 0.5


def lstm_kernel(emb_ref, wih_ref, whh_ref, bias_ref,
                lstm_out_ref, pooled_ref,
                h_ref, c_ref, mx_ref, sm_ref, *, inv_seq_len):
    """grid = (batch_blocks ["parallel"], time_blocks ["arbitrary"]).

    emb_ref:      (T_blk, B_tile, E)  time-major embedding block
    wih_ref:      (4, E, H)           per-gate input weights   (resident)
    whh_ref:      (4, H, H)           per-gate recurrent weights (resident)
    bias_ref:     (4, 1, H)           per-gate bias b_ih + b_hh  (resident, f32)
    lstm_out_ref: (B_tile, T_blk*H)   lane-dense hidden-state output block
    pooled_ref:   (B_tile, 3H)        [h_last | max | avg], written at last t
    h/c/mx/sm:    (B_tile, H)         VMEM scratch carrying the recurrence state
    """
    t = pl.program_id(1)
    nt = pl.num_programs(1)
    T_blk, B_tile, E = emb_ref.shape
    H = whh_ref.shape[-1]

    @pl.when(t == 0)
    def _init():
        h_ref[...] = jnp.zeros_like(h_ref)
        c_ref[...] = jnp.zeros_like(c_ref)
        mx_ref[...] = jnp.full_like(mx_ref, -jnp.inf)
        sm_ref[...] = jnp.zeros_like(sm_ref)

    h = h_ref[...]
    c = c_ref[...]
    mx = mx_ref[...]
    sm = sm_ref[...]

    # Fused input projection: one (T_blk*B_tile, E) @ (E, H) MXU matmul per
    # gate per grid step; the gates never touch HBM.  Per-gate weights arrive
    # pre-split, so no lane-offset slicing is needed here or in the time loop.
    emb2d = emb_ref[...].reshape(T_blk * B_tile, E)
    xg = []
    whh = []
    for k in range(4):
        proj = jnp.dot(emb2d, wih_ref[k],
                       preferred_element_type=jnp.float32) + bias_ref[k]
        xg.append(proj.reshape(T_blk, B_tile, H))
        whh.append(whh_ref[k])

    # Short static unroll (T_blk capped at 16 by the wrapper) keeps LLO
    # scheduling visibility without blowing up vreg live ranges.  Only the
    # h @ W_hh dependency is sequential per timestep.
    for tt in range(T_blk):
        h_mm = h.astype(whh_ref.dtype)          # MXU operand dtype (f32 or bf16)
        pre = [xg[k][tt] + jnp.dot(h_mm, whh[k],
                                   preferred_element_type=jnp.float32)
               for k in range(4)]
        i_g = _sigmoid(pre[0])
        f_g = _sigmoid(pre[1])
        g_g = jnp.tanh(pre[2])
        o_g = _sigmoid(pre[3])
        c = f_g * c + i_g * g_g
        h = o_g * jnp.tanh(c)
        # Lane-dense output: the HBM writeback of this block is one dense
        # (B_tile, T_blk*H) slab per grid step (T_blk*H is a multiple of 128).
        lstm_out_ref[:, tt * H:(tt + 1) * H] = h
        mx = jnp.maximum(mx, h)
        sm = sm + h

    h_ref[...] = h
    c_ref[...] = c
    mx_ref[...] = mx
    sm_ref[...] = sm

    @pl.when(t == nt - 1)
    def _finalize():
        # Single (B_tile, 3H) store [h_last | max | avg]; avg is pre-divided so
        # the wrapper's linear head consumes this block directly.
        pooled_ref[...] = jnp.concatenate([h, mx, sm * inv_seq_len], axis=1)


_VMEM_BUDGET = 28 * 1024 * 1024   # conservative across v5e/v6e (128 MiB) & v7x (64 MiB)


def _vmem_estimate(t_blk, b_tile, e, h, w_itemsize):
    emb_in = 2 * t_blk * b_tile * e * w_itemsize        # double-buffered input block
    out_blk = 2 * b_tile * t_blk * h * 4                # double-buffered lstm_out block
    pooled = 2 * b_tile * 3 * h * 4
    weights = (4 * e * h + 4 * h * h) * w_itemsize + 4 * h * 4   # single-buffered
    xg_live = 4 * t_blk * b_tile * h * 4                # per-gate projections (f32)
    state = 4 * b_tile * h * 4
    return emb_in + out_blk + pooled + weights + xg_live + state


def _pick_time_block(seq_len, b_tile, e, h, w_itemsize):
    # Largest T_blk in (16, 8) dividing S whose (B_tile, T_blk*H) output block
    # is 128-lane aligned and fits the VMEM budget; else fall back to the full
    # sequence (block == full dim is always a legal BlockSpec).
    candidates = [tb for tb in (16, 8)
                  if seq_len % tb == 0 and (tb * h) % 128 == 0]
    for tb in candidates:
        if _vmem_estimate(tb, b_tile, e, h, w_itemsize) <= _VMEM_BUDGET:
            return tb
    if candidates:
        return candidates[-1]
    return seq_len


def glove_model_forward(input_ids, params, *, matmul_dtype=jnp.float32):
    """input_ids: (B, S) int32 token ids. Returns (out (B, 1), lstm_out (B, S, H)).

    matmul_dtype=jnp.bfloat16 streams the embedding / weights in bf16 with f32
    accumulation (recommended on v6e/v7x at scale); state stays f32.
    """
    emb_table = params["embedding"]          # (V, E) pretrained GloVe
    w_ih = params["w_ih"]                    # (4H, E)  PyTorch gate order [i,f,g,o]
    w_hh = params["w_hh"]                    # (4H, H)
    b_ih = params["b_ih"]                    # (4H,)
    b_hh = params["b_hh"]                    # (4H,)
    w_lin = params["w_lin"]                  # (1, 3H)
    b_lin = params["b_lin"]                  # (1,)

    B, S = input_ids.shape
    H = w_hh.shape[1]
    E = emb_table.shape[1]
    w_itemsize = jnp.dtype(matmul_dtype).itemsize

    # Embedding gather directly in time-major layout (transpose only the tiny
    # id matrix, never a (B,S,E) activation).  Dropout is eval-mode identity.
    # TODO(synk): training-mode dropout mask after the embedding is not applied.
    emb_tm = jnp.take(emb_table, input_ids.T, axis=0).astype(matmul_dtype)  # (S, B, E)

    # Batch padding / tiling: pad to the native sublane pack of matmul_dtype;
    # B_tile also feeds the leading "parallel" grid axis (both TCs on v7x).
    sublane = {4: 8, 2: 16, 1: 32}.get(w_itemsize, 8)
    b_pad_s = max(sublane, ((B + sublane - 1) // sublane) * sublane)
    B_tile = min(b_pad_s, 64)
    B_pad = ((b_pad_s + B_tile - 1) // B_tile) * B_tile
    if B_pad != B:
        emb_tm = jnp.pad(emb_tm, ((0, 0), (0, B_pad - B), (0, 0)))

    T_blk = _pick_time_block(S, B_tile, E, H, w_itemsize)
    num_t = S // T_blk

    # Per-gate weight layout (leading-axis indexed in the kernel).
    wih4 = w_ih.reshape(4, H, E).transpose(0, 2, 1).astype(matmul_dtype)   # (4, E, H)
    whh4 = w_hh.reshape(4, H, H).transpose(0, 2, 1).astype(matmul_dtype)   # (4, H, H)
    bias4 = (b_ih + b_hh).astype(jnp.float32).reshape(4, 1, H)             # (4, 1, H)

    est = _vmem_estimate(T_blk, B_tile, E, H, w_itemsize)
    vmem_limit = None
    if est > 12 * 1024 * 1024:
        vmem_limit = min(2 * est, 60 * 1024 * 1024)

    kernel = functools.partial(lstm_kernel, inv_seq_len=1.0 / S)
    resident = dict(pipeline_mode=pl.Buffered(1))   # constant index map -> one buffer

    lstm_out_flat, pooled = pl.pallas_call(
        kernel,
        out_shape=(
            jax.ShapeDtypeStruct((B_pad, S * H), jnp.float32),   # lane-dense lstm_out
            jax.ShapeDtypeStruct((B_pad, 3 * H), jnp.float32),   # [h_last | max | avg]
        ),
        grid_spec=pltpu.PrefetchScalarGridSpec(
            num_scalar_prefetch=0,
            grid=(B_pad // B_tile, num_t),
            in_specs=[
                pl.BlockSpec((T_blk, B_tile, E), lambda b, t: (t, b, 0)),
                pl.BlockSpec((4, E, H), lambda b, t: (0, 0, 0), **resident),
                pl.BlockSpec((4, H, H), lambda b, t: (0, 0, 0), **resident),
                pl.BlockSpec((4, 1, H), lambda b, t: (0, 0, 0), **resident),
            ],
            out_specs=[
                pl.BlockSpec((B_tile, T_blk * H), lambda b, t: (b, t)),
                pl.BlockSpec((B_tile, 3 * H), lambda b, t: (b, 0)),
            ],
            scratch_shapes=[pltpu.VMEM((B_tile, H), jnp.float32)] * 4,
        ),
        compiler_params=pltpu.CompilerParams(
            dimension_semantics=("parallel", "arbitrary"),
            vmem_limit_bytes=vmem_limit),
    )(emb_tm, wih4, whh4, bias4)

    lstm_out = lstm_out_flat[:B].reshape(B, S, H)       # pure reshape, no transpose

    # TODO(synk): the PyTorch forward's permute((1,2,0)) pooling (and the
    # invalid num_layers=2 forward arg) only make sense for a time-major,
    # single-layer interpretation; we implement the intended sequence-dim
    # max/avg pooling over the single-layer LSTM declared in __init__.
    concat = pooled[:B]                                  # (B, 3H), avg already /S
    out = concat @ w_lin.T + b_lin                       # (B, 1)
    return out, lstm_out


def reference_forward(input_ids, params):
    emb = jnp.take(params["embedding"], input_ids, axis=0)      # (B, S, E)
    H = params["w_hh"].shape[1]
    wih_t = params["w_ih"].T
    whh_t = params["w_hh"].T
    bias = params["b_ih"] + params["b_hh"]
    B = emb.shape[0]

    def step(carry, x_t):
        h, c = carry
        gates = x_t @ wih_t + h @ whh_t + bias
        i = jax.nn.sigmoid(gates[:, 0 * H:1 * H])
        f = jax.nn.sigmoid(gates[:, 1 * H:2 * H])
        g = jnp.tanh(gates[:, 2 * H:3 * H])
        o = jax.nn.sigmoid(gates[:, 3 * H:4 * H])
        c = f * c + i * g
        h = o * jnp.tanh(c)
        return (h, c), h

    h0 = jnp.zeros((B, H), jnp.float32)
    c0 = jnp.zeros((B, H), jnp.float32)
    (h_last, _), hs = lax.scan(step, (h0, c0), jnp.transpose(emb, (1, 0, 2)))
    lstm_out = jnp.transpose(hs, (1, 0, 2))                     # (B, S, H)
    max_pool = jnp.max(lstm_out, axis=1)
    avg_pool = jnp.mean(lstm_out, axis=1)
    concat = jnp.concatenate([h_last, max_pool, avg_pool], axis=1)
    out = concat @ params["w_lin"].T + params["b_lin"]
    return out, lstm_out


if __name__ == "__main__":
    vocab_size = 16
    embedding_size = 32
    hidden_size = 32
    batch, seq = 2, 8

    key = jax.random.PRNGKey(0)
    ks = jax.random.split(key, 8)
    bound = 1.0 / jnp.sqrt(hidden_size)
    params = {
        "embedding": jax.random.normal(ks[0], (vocab_size, embedding_size), jnp.float32),
        "w_ih": jax.random.uniform(ks[1], (4 * hidden_size, embedding_size), jnp.float32, -bound, bound),
        "w_hh": jax.random.uniform(ks[2], (4 * hidden_size, hidden_size), jnp.float32, -bound, bound),
        "b_ih": jax.random.uniform(ks[3], (4 * hidden_size,), jnp.float32, -bound, bound),
        "b_hh": jax.random.uniform(ks[4], (4 * hidden_size,), jnp.float32, -bound, bound),
        "w_lin": jax.random.uniform(ks[5], (1, 3 * hidden_size), jnp.float32, -bound, bound),
        "b_lin": jax.random.uniform(ks[6], (1,), jnp.float32, -bound, bound),
    }
    input_ids = jax.random.randint(ks[7], (batch, seq), 0, vocab_size, jnp.int32)

    # f32 path (strict check against the pure-JAX reference).
    out, lstm_out = jax.jit(glove_model_forward)(input_ids, params)
    jax.block_until_ready((out, lstm_out))

    ref_out, ref_lstm_out = reference_forward(input_ids, params)
    assert out.shape == (batch, 1)
    assert lstm_out.shape == (batch, seq, hidden_size)
    assert jnp.allclose(out, ref_out, atol=1e-3, rtol=1e-3)
    assert jnp.allclose(lstm_out, ref_lstm_out, atol=1e-3, rtol=1e-3)

    # bf16-streamed path (v6e/v7x recommendation): loose sanity check only.
    out_bf, lstm_out_bf = jax.jit(
        functools.partial(glove_model_forward, matmul_dtype=jnp.bfloat16)
    )(input_ids, params)
    jax.block_until_ready((out_bf, lstm_out_bf))
    assert out_bf.shape == (batch, 1)
    assert lstm_out_bf.shape == (batch, seq, hidden_size)
    assert jnp.allclose(out_bf, ref_out, atol=1e-1, rtol=1e-1)

    print("KERNEL_OK")
</pallas_src>

<mosaic_0001>
module attributes {stable_mosaic.version = 11 : i64} {
  func.func @lstm_kernel(%arg0: i32, %arg1: i32, %arg2: memref<8x8x32xf32, #tpu.memory_space<vmem>>, %arg3: memref<4x32x32xf32, #tpu.memory_space<vmem>>, %arg4: memref<4x32x32xf32, #tpu.memory_space<vmem>>, %arg5: memref<4x1x32xf32, #tpu.memory_space<vmem>>, %arg6: memref<8x256xf32, #tpu.memory_space<vmem>>, %arg7: memref<8x96xf32, #tpu.memory_space<vmem>>, %arg8: memref<8x32xf32, #tpu.memory_space<vmem>>, %arg9: memref<8x32xf32, #tpu.memory_space<vmem>>, %arg10: memref<8x32xf32, #tpu.memory_space<vmem>>, %arg11: memref<8x32xf32, #tpu.memory_space<vmem>>) attributes {dimension_semantics = [#tpu.dimension_semantics<parallel>, #tpu.dimension_semantics<arbitrary>], iteration_bounds = array<i64: 1, 1>, scalar_prefetch = 0 : i64, scratch_operands = 4 : i64, tpu.core_type = #tpu.core_type<tc>, window_params = [{transform_indices = @transform_0, window_bounds = array<i64: 8, 8, 32>}, {pipeline_mode = #tpu.pipeline_mode<synchronous>, transform_indices = @transform_1, window_bounds = array<i64: 4, 32, 32>}, {pipeline_mode = #tpu.pipeline_mode<synchronous>, transform_indices = @transform_2, window_bounds = array<i64: 4, 32, 32>}, {pipeline_mode = #tpu.pipeline_mode<synchronous>, transform_indices = @transform_3, window_bounds = array<i64: 4, 1, 32>}, {transform_indices = @transform_4, window_bounds = array<i64: 8, 256>}, {transform_indices = @transform_5, window_bounds = array<i64: 8, 96>}]} {
    %c0_i32 = arith.constant 0 : i32
    %0 = arith.cmpi eq, %arg1, %c0_i32 : i32
    %1 = arith.extui %0 : i1 to i32
    %c0_i32_0 = arith.constant 0 : i32
    %2 = arith.cmpi ne, %1, %c0_i32_0 : i32
    scf.if %2 {
      %cst_170 = arith.constant 0.000000e+00 : f32
      %424 = vector.broadcast %cst_170 : f32 to vector<8x32xf32>
      %c0_171 = arith.constant 0 : index
      %c0_172 = arith.constant 0 : index
      %425 = vector.load %arg8[%c0_171, %c0_172] : memref<8x32xf32, #tpu.memory_space<vmem>>, vector<8x32xf32>
      tpu.vector_store %arg8[%c0_171, %c0_172], %424 {strides = array<i32>} : memref<8x32xf32, #tpu.memory_space<vmem>>, vector<8x32xf32>,
      %cst_173 = arith.constant 0.000000e+00 : f32
      %426 = vector.broadcast %cst_173 : f32 to vector<8x32xf32>
      %c0_174 = arith.constant 0 : index
      %c0_175 = arith.constant 0 : index
      %427 = vector.load %arg9[%c0_174, %c0_175] : memref<8x32xf32, #tpu.memory_space<vmem>>, vector<8x32xf32>
      tpu.vector_store %arg9[%c0_174, %c0_175], %426 {strides = array<i32>} : memref<8x32xf32, #tpu.memory_space<vmem>>, vector<8x32xf32>,
      %cst_176 = arith.constant 0xFF800000 : f32
      %428 = vector.broadcast %cst_176 : f32 to vector<8x32xf32>
      %c0_177 = arith.constant 0 : index
      %c0_178 = arith.constant 0 : index
      %429 = vector.load %arg10[%c0_177, %c0_178] : memref<8x32xf32, #tpu.memory_space<vmem>>, vector<8x32xf32>
      tpu.vector_store %arg10[%c0_177, %c0_178], %428 {strides = array<i32>} : memref<8x32xf32, #tpu.memory_space<vmem>>, vector<8x32xf32>,
      %cst_179 = arith.constant 0.000000e+00 : f32
      %430 = vector.broadcast %cst_179 : f32 to vector<8x32xf32>
      %c0_180 = arith.constant 0 : index
      %c0_181 = arith.constant 0 : index
      %431 = vector.load %arg11[%c0_180, %c0_181] : memref<8x32xf32, #tpu.memory_space<vmem>>, vector<8x32xf32>
      tpu.vector_store %arg11[%c0_180, %c0_181], %430 {strides = array<i32>} : memref<8x32xf32, #tpu.memory_space<vmem>>, vector<8x32xf32>,
    } else {
    }
    %c0 = arith.constant 0 : index
    %c0_1 = arith.constant 0 : index
    %3 = vector.load %arg8[%c0, %c0_1] : memref<8x32xf32, #tpu.memory_space<vmem>>, vector<8x32xf32>
    %c0_2 = arith.constant 0 : index
    %c0_3 = arith.constant 0 : index
    %4 = vector.load %arg9[%c0_2, %c0_3] : memref<8x32xf32, #tpu.memory_space<vmem>>, vector<8x32xf32>
    %c0_4 = arith.constant 0 : index
    %c0_5 = arith.constant 0 : index
    %5 = vector.load %arg10[%c0_4, %c0_5] : memref<8x32xf32, #tpu.memory_space<vmem>>, vector<8x32xf32>
    %c0_6 = arith.constant 0 : index
    %c0_7 = arith.constant 0 : index
    %6 = vector.load %arg11[%c0_6, %c0_7] : memref<8x32xf32, #tpu.memory_space<vmem>>, vector<8x32xf32>
    %c0_8 = arith.constant 0 : index
    %c0_9 = arith.constant 0 : index
    %c0_10 = arith.constant 0 : index
    %7 = vector.load %arg2[%c0_8, %c0_9, %c0_10] : memref<8x8x32xf32, #tpu.memory_space<vmem>>, vector<8x8x32xf32>
    %8 = vector.shape_cast %7 : vector<8x8x32xf32> to vector<64x32xf32>
    %c0_11 = arith.constant 0 : index
    %c0_12 = arith.constant 0 : index
    %c0_13 = arith.constant 0 : index
    %9 = vector.load %arg3[%c0_11, %c0_12, %c0_13] : memref<4x32x32xf32, #tpu.memory_space<vmem>>, vector<1x32x32xf32>
    %10 = vector.shape_cast %9 : vector<1x32x32xf32> to vector<32x32xf32>
    %cst = arith.constant dense<0.000000e+00> : vector<64x32xf32>
    %11 = tpu.matmul %8, %10, %cst {dimension_numbers = #tpu.dot_dimension_numbers<[1], [0], [0], [1], [0, 0, 1, 1], [], []>} : vector<64x32xf32>, vector<32x32xf32>, vector<64x32xf32> -> vector<64x32xf32>
    %c0_14 = arith.constant 0 : index
    %c0_15 = arith.constant 0 : index
    %c0_16 = arith.constant 0 : index
    %12 = vector.load %arg5[%c0_14, %c0_15, %c0_16] : memref<4x1x32xf32, #tpu.memory_space<vmem>>, vector<1x1x32xf32>
    %13 = vector.shape_cast %12 : vector<1x1x32xf32> to vector<1x32xf32>
    %14 = vector.broadcast %13 : vector<1x32xf32> to vector<64x32xf32>
    %15 = arith.addf %11, %14 : vector<64x32xf32>
    %16 = vector.shape_cast %15 : vector<64x32xf32> to vector<8x8x32xf32>
    %c0_17 = arith.constant 0 : index
    %c0_18 = arith.constant 0 : index
    %c0_19 = arith.constant 0 : index
    %17 = vector.load %arg4[%c0_17, %c0_18, %c0_19] : memref<4x32x32xf32, #tpu.memory_space<vmem>>, vector<1x32x32xf32>
    %18 = vector.shape_cast %17 : vector<1x32x32xf32> to vector<32x32xf32>
    %c1 = arith.constant 1 : index
    %c0_20 = arith.constant 0 : index
    %c0_21 = arith.constant 0 : index
    %19 = vector.load %arg3[%c1, %c0_20, %c0_21] : memref<4x32x32xf32, #tpu.memory_space<vmem>>, vector<1x32x32xf32>
    %20 = vector.shape_cast %19 : vector<1x32x32xf32> to vector<32x32xf32>
    %cst_22 = arith.constant dense<0.000000e+00> : vector<64x32xf32>
    %21 = tpu.matmul %8, %20, %cst_22 {dimension_numbers = #tpu.dot_dimension_numbers<[1], [0], [0], [1], [0, 0, 1, 1], [], []>} : vector<64x32xf32>, vector<32x32xf32>, vector<64x32xf32> -> vector<64x32xf32>
    %c1_23 = arith.constant 1 : index
    %c0_24 = arith.constant 0 : index
    %c0_25 = arith.constant 0 : index
    %22 = vector.load %arg5[%c1_23, %c0_24, %c0_25] : memref<4x1x32xf32, #tpu.memory_space<vmem>>, vector<1x1x32xf32>
    %23 = vector.shape_cast %22 : vector<1x1x32xf32> to vector<1x32xf32>
    %24 = vector.broadcast %23 : vector<1x32xf32> to vector<64x32xf32>
    %25 = arith.addf %21, %24 : vector<64x32xf32>
    %26 = vector.shape_cast %25 : vector<64x32xf32> to vector<8x8x32xf32>
    %c1_26 = arith.constant 1 : index
    %c0_27 = arith.constant 0 : index
    %c0_28 = arith.constant 0 : index
    %27 = vector.load %arg4[%c1_26, %c0_27, %c0_28] : memref<4x32x32xf32, #tpu.memory_space<vmem>>, vector<1x32x32xf32>
    %28 = vector.shape_cast %27 : vector<1x32x32xf32> to vector<32x32xf32>
    %c2 = arith.constant 2 : index
    %c0_29 = arith.constant 0 : index
    %c0_30 = arith.constant 0 : index
    %29 = vector.load %arg3[%c2, %c0_29, %c0_30] : memref<4x32x32xf32, #tpu.memory_space<vmem>>, vector<1x32x32xf32>
    %30 = vector.shape_cast %29 : vector<1x32x32xf32> to vector<32x32xf32>
    %cst_31 = arith.constant dense<0.000000e+00> : vector<64x32xf32>
    %31 = tpu.matmul %8, %30, %cst_31 {dimension_numbers = #tpu.dot_dimension_numbers<[1], [0], [0], [1], [0, 0, 1, 1], [], []>} : vector<64x32xf32>, vector<32x32xf32>, vector<64x32xf32> -> vector<64x32xf32>
    %c2_32 = arith.constant 2 : index
    %c0_33 = arith.constant 0 : index
    %c0_34 = arith.constant 0 : index
    %32 = vector.load %arg5[%c2_32, %c0_33, %c0_34] : memref<4x1x32xf32, #tpu.memory_space<vmem>>, vector<1x1x32xf32>
    %33 = vector.shape_cast %32 : vector<1x1x32xf32> to vector<1x32xf32>
    %34 = vector.broadcast %33 : vector<1x32xf32> to vector<64x32xf32>
    %35 = arith.addf %31, %34 : vector<64x32xf32>
    %36 = vector.shape_cast %35 : vector<64x32xf32> to vector<8x8x32xf32>
    %c2_35 = arith.constant 2 : index
    %c0_36 = arith.constant 0 : index
    %c0_37 = arith.constant 0 : index
    %37 = vector.load %arg4[%c2_35, %c0_36, %c0_37] : memref<4x32x32xf32, #tpu.memory_space<vmem>>, vector<1x32x32xf32>
    %38 = vector.shape_cast %37 : vector<1x32x32xf32> to vector<32x32xf32>
    %c3 = arith.constant 3 : index
    %c0_38 = arith.constant 0 : index
    %c0_39 = arith.constant 0 : index
    %39 = vector.load %arg3[%c3, %c0_38, %c0_39] : memref<4x32x32xf32, #tpu.memory_space<vmem>>, vector<1x32x32xf32>
    %40 = vector.shape_cast %39 : vector<1x32x32xf32> to vector<32x32xf32>
    %cst_40 = arith.constant dense<0.000000e+00> : vector<64x32xf32>
    %41 = tpu.matmul %8, %40, %cst_40 {dimension_numbers = #tpu.dot_dimension_numbers<[1], [0], [0], [1], [0, 0, 1, 1], [], []>} : vector<64x32xf32>, vector<32x32xf32>, vector<64x32xf32> -> vector<64x32xf32>
    %c3_41 = arith.constant 3 : index
    %c0_42 = arith.constant 0 : index
    %c0_43 = arith.constant 0 : index
    %42 = vector.load %arg5[%c3_41, %c0_42, %c0_43] : memref<4x1x32xf32, #tpu.memory_space<vmem>>, vector<1x1x32xf32>
    %43 = vector.shape_cast %42 : vector<1x1x32xf32> to vector<1x32xf32>
    %44 = vector.broadcast %43 : vector<1x32xf32> to vector<64x32xf32>
    %45 = arith.addf %41, %44 : vector<64x32xf32>
    %46 = vector.shape_cast %45 : vector<64x32xf32> to vector<8x8x32xf32>
    %c3_44 = arith.constant 3 : index
    %c0_45 = arith.constant 0 : index
    %c0_46 = arith.constant 0 : index
    %47 = vector.load %arg4[%c3_44, %c0_45, %c0_46] : memref<4x32x32xf32, #tpu.memory_space<vmem>>, vector<1x32x32xf32>
    %48 = vector.shape_cast %47 : vector<1x32x32xf32> to vector<32x32xf32>
    %49 = vector.extract_strided_slice %16 {offsets = [0, 0, 0], sizes = [1, 8, 32], strides = [1, 1, 1]} : vector<8x8x32xf32> to vector<1x8x32xf32>
    %50 = vector.shape_cast %49 : vector<1x8x32xf32> to vector<8x32xf32>
    %cst_47 = arith.constant dense<0.000000e+00> : vector<8x32xf32>
    %51 = tpu.matmul %3, %18, %cst_47 {dimension_numbers = #tpu.dot_dimension_numbers<[1], [0], [0], [1], [0, 0, 1, 1], [], []>} : vector<8x32xf32>, vector<32x32xf32>, vector<8x32xf32> -> vector<8x32xf32>
    %52 = arith.addf %50, %51 : vector<8x32xf32>
    %53 = vector.extract_strided_slice %26 {offsets = [0, 0, 0], sizes = [1, 8, 32], strides = [1, 1, 1]} : vector<8x8x32xf32> to vector<1x8x32xf32>
    %54 = vector.shape_cast %53 : vector<1x8x32xf32> to vector<8x32xf32>
    %cst_48 = arith.constant dense<0.000000e+00> : vector<8x32xf32>
    %55 = tpu.matmul %3, %28, %cst_48 {dimension_numbers = #tpu.dot_dimension_numbers<[1], [0], [0], [1], [0, 0, 1, 1], [], []>} : vector<8x32xf32>, vector<32x32xf32>, vector<8x32xf32> -> vector<8x32xf32>
    %56 = arith.addf %54, %55 : vector<8x32xf32>
    %57 = vector.extract_strided_slice %36 {offsets = [0, 0, 0], sizes = [1, 8, 32], strides = [1, 1, 1]} : vector<8x8x32xf32> to vector<1x8x32xf32>
    %58 = vector.shape_cast %57 : vector<1x8x32xf32> to vector<8x32xf32>
    %cst_49 = arith.constant dense<0.000000e+00> : vector<8x32xf32>
    %59 = tpu.matmul %3, %38, %cst_49 {dimension_numbers = #tpu.dot_dimension_numbers<[1], [0], [0], [1], [0, 0, 1, 1], [], []>} : vector<8x32xf32>, vector<32x32xf32>, vector<8x32xf32> -> vector<8x32xf32>
    %60 = arith.addf %58, %59 : vector<8x32xf32>
    %61 = vector.extract_strided_slice %46 {offsets = [0, 0, 0], sizes = [1, 8, 32], strides = [1, 1, 1]} : vector<8x8x32xf32> to vector<1x8x32xf32>
    %62 = vector.shape_cast %61 : vector<1x8x32xf32> to vector<8x32xf32>
    %cst_50 = arith.constant dense<0.000000e+00> : vector<8x32xf32>
    %63 = tpu.matmul %3, %48, %cst_50 {dimension_numbers = #tpu.dot_dimension_numbers<[1], [0], [0], [1], [0, 0, 1, 1], [], []>} : vector<8x32xf32>, vector<32x32xf32>, vector<8x32xf32> -> vector<8x32xf32>
    %64 = arith.addf %62, %63 : vector<8x32xf32>
    %cst_51 = arith.constant 5.000000e-01 : f32
    %65 = vector.broadcast %cst_51 : f32 to vector<8x32xf32>
    %66 = arith.mulf %65, %52 : vector<8x32xf32>
    %67 = math.tanh %66 : vector<8x32xf32>
    %cst_52 = arith.constant 5.000000e-01 : f32
    %68 = vector.broadcast %cst_52 : f32 to vector<8x32xf32>
    %69 = arith.mulf %68, %67 : vector<8x32xf32>
    %cst_53 = arith.constant 5.000000e-01 : f32
    %70 = vector.broadcast %cst_53 : f32 to vector<8x32xf32>
    %71 = arith.addf %69, %70 : vector<8x32xf32>
    %cst_54 = arith.constant 5.000000e-01 : f32
    %72 = vector.broadcast %cst_54 : f32 to vector<8x32xf32>
    %73 = arith.mulf %72, %56 : vector<8x32xf32>
    %74 = math.tanh %73 : vector<8x32xf32>
    %cst_55 = arith.constant 5.000000e-01 : f32
    %75 = vector.broadcast %cst_55 : f32 to vector<8x32xf32>
    %76 = arith.mulf %75, %74 : vector<8x32xf32>
    %cst_56 = arith.constant 5.000000e-01 : f32
    %77 = vector.broadcast %cst_56 : f32 to vector<8x32xf32>
    %78 = arith.addf %76, %77 : vector<8x32xf32>
    %79 = math.tanh %60 : vector<8x32xf32>
    %cst_57 = arith.constant 5.000000e-01 : f32
    %80 = vector.broadcast %cst_57 : f32 to vector<8x32xf32>
    %81 = arith.mulf %80, %64 : vector<8x32xf32>
    %82 = math.tanh %81 : vector<8x32xf32>
    %cst_58 = arith.constant 5.000000e-01 : f32
    %83 = vector.broadcast %cst_58 : f32 to vector<8x32xf32>
    %84 = arith.mulf %83, %82 : vector<8x32xf32>
    %cst_59 = arith.constant 5.000000e-01 : f32
    %85 = vector.broadcast %cst_59 : f32 to vector<8x32xf32>
    %86 = arith.addf %84, %85 : vector<8x32xf32>
    %87 = arith.mulf %78, %4 : vector<8x32xf32>
    %88 = arith.mulf %71, %79 : vector<8x32xf32>
    %89 = arith.addf %87, %88 : vector<8x32xf32>
    %90 = math.tanh %89 : vector<8x32xf32>
    %91 = arith.mulf %86, %90 : vector<8x32xf32>
    %c0_60 = arith.constant 0 : index
    %c0_61 = arith.constant 0 : index
    %92 = vector.load %arg6[%c0_60, %c0_61] : memref<8x256xf32, #tpu.memory_space<vmem>>, vector<8x32xf32>
    tpu.vector_store %arg6[%c0_60, %c0_61], %91 {strides = array<i32>} : memref<8x256xf32, #tpu.memory_space<vmem>>, vector<8x32xf32>,
    %93 = arith.maximumf %5, %91 : vector<8x32xf32>
    %94 = arith.addf %6, %91 : vector<8x32xf32>
    %95 = vector.extract_strided_slice %16 {offsets = [1, 0, 0], sizes = [1, 8, 32], strides = [1, 1, 1]} : vector<8x8x32xf32> to vector<1x8x32xf32>
    %96 = vector.shape_cast %95 : vector<1x8x32xf32> to vector<8x32xf32>
    %cst_62 = arith.constant dense<0.000000e+00> : vector<8x32xf32>
    %97 = tpu.matmul %91, %18, %cst_62 {dimension_numbers = #tpu.dot_dimension_numbers<[1], [0], [0], [1], [0, 0, 1, 1], [], []>} : vector<8x32xf32>, vector<32x32xf32>, vector<8x32xf32> -> vector<8x32xf32>
    %98 = arith.addf %96, %97 : vector<8x32xf32>
    %99 = vector.extract_strided_slice %26 {offsets = [1, 0, 0], sizes = [1, 8, 32], strides = [1, 1, 1]} : vector<8x8x32xf32> to vector<1x8x32xf32>
    %100 = vector.shape_cast %99 : vector<1x8x32xf32> to vector<8x32xf32>
    %cst_63 = arith.constant dense<0.000000e+00> : vector<8x32xf32>
    %101 = tpu.matmul %91, %28, %cst_63 {dimension_numbers = #tpu.dot_dimension_numbers<[1], [0], [0], [1], [0, 0, 1, 1], [], []>} : vector<8x32xf32>, vector<32x32xf32>, vector<8x32xf32> -> vector<8x32xf32>
    %102 = arith.addf %100, %101 : vector<8x32xf32>
    %103 = vector.extract_strided_slice %36 {offsets = [1, 0, 0], sizes = [1, 8, 32], strides = [1, 1, 1]} : vector<8x8x32xf32> to vector<1x8x32xf32>
    %104 = vector.shape_cast %103 : vector<1x8x32xf32> to vector<8x32xf32>
    %cst_64 = arith.constant dense<0.000000e+00> : vector<8x32xf32>
    %105 = tpu.matmul %91, %38, %cst_64 {dimension_numbers = #tpu.dot_dimension_numbers<[1], [0], [0], [1], [0, 0, 1, 1], [], []>} : vector<8x32xf32>, vector<32x32xf32>, vector<8x32xf32> -> vector<8x32xf32>
    %106 = arith.addf %104, %105 : vector<8x32xf32>
    %107 = vector.extract_strided_slice %46 {offsets = [1, 0, 0], sizes = [1, 8, 32], strides = [1, 1, 1]} : vector<8x8x32xf32> to vector<1x8x32xf32>
    %108 = vector.shape_cast %107 : vector<1x8x32xf32> to vector<8x32xf32>
    %cst_65 = arith.constant dense<0.000000e+00> : vector<8x32xf32>
    %109 = tpu.matmul %91, %48, %cst_65 {dimension_numbers = #tpu.dot_dimension_numbers<[1], [0], [0], [1], [0, 0, 1, 1], [], []>} : vector<8x32xf32>, vector<32x32xf32>, vector<8x32xf32> -> vector<8x32xf32>
    %110 = arith.addf %108, %109 : vector<8x32xf32>
    %cst_66 = arith.constant 5.000000e-01 : f32
    %111 = vector.broadcast %cst_66 : f32 to vector<8x32xf32>
    %112 = arith.mulf %111, %98 : vector<8x32xf32>
    %113 = math.tanh %112 : vector<8x32xf32>
    %cst_67 = arith.constant 5.000000e-01 : f32
    %114 = vector.broadcast %cst_67 : f32 to vector<8x32xf32>
    %115 = arith.mulf %114, %113 : vector<8x32xf32>
    %cst_68 = arith.constant 5.000000e-01 : f32
    %116 = vector.broadcast %cst_68 : f32 to vector<8x32xf32>
    %117 = arith.addf %115, %116 : vector<8x32xf32>
    %cst_69 = arith.constant 5.000000e-01 : f32
    %118 = vector.broadcast %cst_69 : f32 to vector<8x32xf32>
    %119 = arith.mulf %118, %102 : vector<8x32xf32>
    %120 = math.tanh %119 : vector<8x32xf32>
    %cst_70 = arith.constant 5.000000e-01 : f32
    %121 = vector.broadcast %cst_70 : f32 to vector<8x32xf32>
    %122 = arith.mulf %121, %120 : vector<8x32xf32>
    %cst_71 = arith.constant 5.000000e-01 : f32
    %123 = vector.broadcast %cst_71 : f32 to vector<8x32xf32>
    %124 = arith.addf %122, %123 : vector<8x32xf32>
    %125 = math.tanh %106 : vector<8x32xf32>
    %cst_72 = arith.constant 5.000000e-01 : f32
    %126 = vector.broadcast %cst_72 : f32 to vector<8x32xf32>
    %127 = arith.mulf %126, %110 : vector<8x32xf32>
    %128 = math.tanh %127 : vector<8x32xf32>
    %cst_73 = arith.constant 5.000000e-01 : f32
    %129 = vector.broadcast %cst_73 : f32 to vector<8x32xf32>
    %130 = arith.mulf %129, %128 : vector<8x32xf32>
    %cst_74 = arith.constant 5.000000e-01 : f32
    %131 = vector.broadcast %cst_74 : f32 to vector<8x32xf32>
    %132 = arith.addf %130, %131 : vector<8x32xf32>
    %133 = arith.mulf %124, %89 : vector<8x32xf32>
    %134 = arith.mulf %117, %125 : vector<8x32xf32>
    %135 = arith.addf %133, %134 : vector<8x32xf32>
    %136 = math.tanh %135 : vector<8x32xf32>
    %137 = arith.mulf %132, %136 : vector<8x32xf32>
    %c0_75 = arith.constant 0 : index
    %c32 = arith.constant 32 : index
    %138 = vector.load %arg6[%c0_75, %c32] : memref<8x256xf32, #tpu.memory_space<vmem>>, vector<8x32xf32>
    tpu.vector_store %arg6[%c0_75, %c32], %137 {strides = array<i32>} : memref<8x256xf32, #tpu.memory_space<vmem>>, vector<8x32xf32>,
    %139 = arith.maximumf %93, %137 : vector<8x32xf32>
    %140 = arith.addf %94, %137 : vector<8x32xf32>
    %141 = vector.extract_strided_slice %16 {offsets = [2, 0, 0], sizes = [1, 8, 32], strides = [1, 1, 1]} : vector<8x8x32xf32> to vector<1x8x32xf32>
    %142 = vector.shape_cast %141 : vector<1x8x32xf32> to vector<8x32xf32>
    %cst_76 = arith.constant dense<0.000000e+00> : vector<8x32xf32>
    %143 = tpu.matmul %137, %18, %cst_76 {dimension_numbers = #tpu.dot_dimension_numbers<[1], [0], [0], [1], [0, 0, 1, 1], [], []>} : vector<8x32xf32>, vector<32x32xf32>, vector<8x32xf32> -> vector<8x32xf32>
    %144 = arith.addf %142, %143 : vector<8x32xf32>
    %145 = vector.extract_strided_slice %26 {offsets = [2, 0, 0], sizes = [1, 8, 32], strides = [1, 1, 1]} : vector<8x8x32xf32> to vector<1x8x32xf32>
    %146 = vector.shape_cast %145 : vector<1x8x32xf32> to vector<8x32xf32>
    %cst_77 = arith.constant dense<0.000000e+00> : vector<8x32xf32>
    %147 = tpu.matmul %137, %28, %cst_77 {dimension_numbers = #tpu.dot_dimension_numbers<[1], [0], [0], [1], [0, 0, 1, 1], [], []>} : vector<8x32xf32>, vector<32x32xf32>, vector<8x32xf32> -> vector<8x32xf32>
    %148 = arith.addf %146, %147 : vector<8x32xf32>
    %149 = vector.extract_strided_slice %36 {offsets = [2, 0, 0], sizes = [1, 8, 32], strides = [1, 1, 1]} : vector<8x8x32xf32> to vector<1x8x32xf32>
    %150 = vector.shape_cast %149 : vector<1x8x32xf32> to vector<8x32xf32>
    %cst_78 = arith.constant dense<0.000000e+00> : vector<8x32xf32>
    %151 = tpu.matmul %137, %38, %cst_78 {dimension_numbers = #tpu.dot_dimension_numbers<[1], [0], [0], [1], [0, 0, 1, 1], [], []>} : vector<8x32xf32>, vector<32x32xf32>, vector<8x32xf32> -> vector<8x32xf32>
    %152 = arith.addf %150, %151 : vector<8x32xf32>
    %153 = vector.extract_strided_slice %46 {offsets = [2, 0, 0], sizes = [1, 8, 32], strides = [1, 1, 1]} : vector<8x8x32xf32> to vector<1x8x32xf32>
    %154 = vector.shape_cast %153 : vector<1x8x32xf32> to vector<8x32xf32>
    %cst_79 = arith.constant dense<0.000000e+00> : vector<8x32xf32>
    %155 = tpu.matmul %137, %48, %cst_79 {dimension_numbers = #tpu.dot_dimension_numbers<[1], [0], [0], [1], [0, 0, 1, 1], [], []>} : vector<8x32xf32>, vector<32x32xf32>, vector<8x32xf32> -> vector<8x32xf32>
    %156 = arith.addf %154, %155 : vector<8x32xf32>
    %cst_80 = arith.constant 5.000000e-01 : f32
    %157 = vector.broadcast %cst_80 : f32 to vector<8x32xf32>
    %158 = arith.mulf %157, %144 : vector<8x32xf32>
    %159 = math.tanh %158 : vector<8x32xf32>
    %cst_81 = arith.constant 5.000000e-01 : f32
    %160 = vector.broadcast %cst_81 : f32 to vector<8x32xf32>
    %161 = arith.mulf %160, %159 : vector<8x32xf32>
    %cst_82 = arith.constant 5.000000e-01 : f32
    %162 = vector.broadcast %cst_82 : f32 to vector<8x32xf32>
    %163 = arith.addf %161, %162 : vector<8x32xf32>
    %cst_83 = arith.constant 5.000000e-01 : f32
    %164 = vector.broadcast %cst_83 : f32 to vector<8x32xf32>
    %165 = arith.mulf %164, %148 : vector<8x32xf32>
    %166 = math.tanh %165 : vector<8x32xf32>
    %cst_84 = arith.constant 5.000000e-01 : f32
    %167 = vector.broadcast %cst_84 : f32 to vector<8x32xf32>
    %168 = arith.mulf %167, %166 : vector<8x32xf32>
    %cst_85 = arith.constant 5.000000e-01 : f32
    %169 = vector.broadcast %cst_85 : f32 to vector<8x32xf32>
    %170 = arith.addf %168, %169 : vector<8x32xf32>
    %171 = math.tanh %152 : vector<8x32xf32>
    %cst_86 = arith.constant 5.000000e-01 : f32
    %172 = vector.broadcast %cst_86 : f32 to vector<8x32xf32>
    %173 = arith.mulf %172, %156 : vector<8x32xf32>
    %174 = math.tanh %173 : vector<8x32xf32>
    %cst_87 = arith.constant 5.000000e-01 : f32
    %175 = vector.broadcast %cst_87 : f32 to vector<8x32xf32>
    %176 = arith.mulf %175, %174 : vector<8x32xf32>
    %cst_88 = arith.constant 5.000000e-01 : f32
    %177 = vector.broadcast %cst_88 : f32 to vector<8x32xf32>
    %178 = arith.addf %176, %177 : vector<8x32xf32>
    %179 = arith.mulf %170, %135 : vector<8x32xf32>
    %180 = arith.mulf %163, %171 : vector<8x32xf32>
    %181 = arith.addf %179, %180 : vector<8x32xf32>
    %182 = math.tanh %181 : vector<8x32xf32>
    %183 = arith.mulf %178, %182 : vector<8x32xf32>
    %c0_89 = arith.constant 0 : index
    %c64 = arith.constant 64 : index
    %184 = vector.load %arg6[%c0_89, %c64] : memref<8x256xf32, #tpu.memory_space<vmem>>, vector<8x32xf32>
    tpu.vector_store %arg6[%c0_89, %c64], %183 {strides = array<i32>} : memref<8x256xf32, #tpu.memory_space<vmem>>, vector<8x32xf32>,
    %185 = arith.maximumf %139, %183 : vector<8x32xf32>
    %186 = arith.addf %140, %183 : vector<8x32xf32>
    %187 = vector.extract_strided_slice %16 {offsets = [3, 0, 0], sizes = [1, 8, 32], strides = [1, 1, 1]} : vector<8x8x32xf32> to vector<1x8x32xf32>
    %188 = vector.shape_cast %187 : vector<1x8x32xf32> to vector<8x32xf32>
    %cst_90 = arith.constant dense<0.000000e+00> : vector<8x32xf32>
    %189 = tpu.matmul %183, %18, %cst_90 {dimension_numbers = #tpu.dot_dimension_numbers<[1], [0], [0], [1], [0, 0, 1, 1], [], []>} : vector<8x32xf32>, vector<32x32xf32>, vector<8x32xf32> -> vector<8x32xf32>
    %190 = arith.addf %188, %189 : vector<8x32xf32>
    %191 = vector.extract_strided_slice %26 {offsets = [3, 0, 0], sizes = [1, 8, 32], strides = [1, 1, 1]} : vector<8x8x32xf32> to vector<1x8x32xf32>
    %192 = vector.shape_cast %191 : vector<1x8x32xf32> to vector<8x32xf32>
    %cst_91 = arith.constant dense<0.000000e+00> : vector<8x32xf32>
    %193 = tpu.matmul %183, %28, %cst_91 {dimension_numbers = #tpu.dot_dimension_numbers<[1], [0], [0], [1], [0, 0, 1, 1], [], []>} : vector<8x32xf32>, vector<32x32xf32>, vector<8x32xf32> -> vector<8x32xf32>
    %194 = arith.addf %192, %193 : vector<8x32xf32>
    %195 = vector.extract_strided_slice %36 {offsets = [3, 0, 0], sizes = [1, 8, 32], strides = [1, 1, 1]} : vector<8x8x32xf32> to vector<1x8x32xf32>
    %196 = vector.shape_cast %195 : vector<1x8x32xf32> to vector<8x32xf32>
    %cst_92 = arith.constant dense<0.000000e+00> : vector<8x32xf32>
    %197 = tpu.matmul %183, %38, %cst_92 {dimension_numbers = #tpu.dot_dimension_numbers<[1], [0], [0], [1], [0, 0, 1, 1], [], []>} : vector<8x32xf32>, vector<32x32xf32>, vector<8x32xf32> -> vector<8x32xf32>
    %198 = arith.addf %196, %197 : vector<8x32xf32>
    %199 = vector.extract_strided_slice %46 {offsets = [3, 0, 0], sizes = [1, 8, 32], strides = [1, 1, 1]} : vector<8x8x32xf32> to vector<1x8x32xf32>
    %200 = vector.shape_cast %199 : vector<1x8x32xf32> to vector<8x32xf32>
    %cst_93 = arith.constant dense<0.000000e+00> : vector<8x32xf32>
    %201 = tpu.matmul %183, %48, %cst_93 {dimension_numbers = #tpu.dot_dimension_numbers<[1], [0], [0], [1], [0, 0, 1, 1], [], []>} : vector<8x32xf32>, vector<32x32xf32>, vector<8x32xf32> -> vector<8x32xf32>
    %202 = arith.addf %200, %201 : vector<8x32xf32>
    %cst_94 = arith.constant 5.000000e-01 : f32
    %203 = vector.broadcast %cst_94 : f32 to vector<8x32xf32>
    %204 = arith.mulf %203, %190 : vector<8x32xf32>
    %205 = math.tanh %204 : vector<8x32xf32>
    %cst_95 = arith.constant 5.000000e-01 : f32
    %206 = vector.broadcast %cst_95 : f32 to vector<8x32xf32>
    %207 = arith.mulf %206, %205 : vector<8x32xf32>
    %cst_96 = arith.constant 5.000000e-01 : f32
    %208 = vector.broadcast %cst_96 : f32 to vector<8x32xf32>
    %209 = arith.addf %207, %208 : vector<8x32xf32>
    %cst_97 = arith.constant 5.000000e-01 : f32
    %210 = vector.broadcast %cst_97 : f32 to vector<8x32xf32>
    %211 = arith.mulf %210, %194 : vector<8x32xf32>
    %212 = math.tanh %211 : vector<8x32xf32>
    %cst_98 = arith.constant 5.000000e-01 : f32
    %213 = vector.broadcast %cst_98 : f32 to vector<8x32xf32>
    %214 = arith.mulf %213, %212 : vector<8x32xf32>
    %cst_99 = arith.constant 5.000000e-01 : f32
    %215 = vector.broadcast %cst_99 : f32 to vector<8x32xf32>
    %216 = arith.addf %214, %215 : vector<8x32xf32>
    %217 = math.tanh %198 : vector<8x32xf32>
    %cst_100 = arith.constant 5.000000e-01 : f32
    %218 = vector.broadcast %cst_100 : f32 to vector<8x32xf32>
    %219 = arith.mulf %218, %202 : vector<8x32xf32>
    %220 = math.tanh %219 : vector<8x32xf32>
    %cst_101 = arith.constant 5.000000e-01 : f32
    %221 = vector.broadcast %cst_101 : f32 to vector<8x32xf32>
    %222 = arith.mulf %221, %220 : vector<8x32xf32>
    %cst_102 = arith.constant 5.000000e-01 : f32
    %223 = vector.broadcast %cst_102 : f32 to vector<8x32xf32>
    %224 = arith.addf %222, %223 : vector<8x32xf32>
    %225 = arith.mulf %216, %181 : vector<8x32xf32>
    %226 = arith.mulf %209, %217 : vector<8x32xf32>
    %227 = arith.addf %225, %226 : vector<8x32xf32>
    %228 = math.tanh %227 : vector<8x32xf32>
    %229 = arith.mulf %224, %228 : vector<8x32xf32>
    %c0_103 = arith.constant 0 : index
    %c96 = arith.constant 96 : index
    %230 = vector.load %arg6[%c0_103, %c96] : memref<8x256xf32, #tpu.memory_space<vmem>>, vector<8x32xf32>
    tpu.vector_store %arg6[%c0_103, %c96], %229 {strides = array<i32>} : memref<8x256xf32, #tpu.memory_space<vmem>>, vector<8x32xf32>,
    %231 = arith.maximumf %185, %229 : vector<8x32xf32>
    %232 = arith.addf %186, %229 : vector<8x32xf32>
    %233 = vector.extract_strided_slice %16 {offsets = [4, 0, 0], sizes = [1, 8, 32], strides = [1, 1, 1]} : vector<8x8x32xf32> to vector<1x8x32xf32>
    %234 = vector.shape_cast %233 : vector<1x8x32xf32> to vector<8x32xf32>
    %cst_104 = arith.constant dense<0.000000e+00> : vector<8x32xf32>
    %235 = tpu.matmul %229, %18, %cst_104 {dimension_numbers = #tpu.dot_dimension_numbers<[1], [0], [0], [1], [0, 0, 1, 1], [], []>} : vector<8x32xf32>, vector<32x32xf32>, vector<8x32xf32> -> vector<8x32xf32>
    %236 = arith.addf %234, %235 : vector<8x32xf32>
    %237 = vector.extract_strided_slice %26 {offsets = [4, 0, 0], sizes = [1, 8, 32], strides = [1, 1, 1]} : vector<8x8x32xf32> to vector<1x8x32xf32>
    %238 = vector.shape_cast %237 : vector<1x8x32xf32> to vector<8x32xf32>
    %cst_105 = arith.constant dense<0.000000e+00> : vector<8x32xf32>
    %239 = tpu.matmul %229, %28, %cst_105 {dimension_numbers = #tpu.dot_dimension_numbers<[1], [0], [0], [1], [0, 0, 1, 1], [], []>} : vector<8x32xf32>, vector<32x32xf32>, vector<8x32xf32> -> vector<8x32xf32>
    %240 = arith.addf %238, %239 : vector<8x32xf32>
    %241 = vector.extract_strided_slice %36 {offsets = [4, 0, 0], sizes = [1, 8, 32], strides = [1, 1, 1]} : vector<8x8x32xf32> to vector<1x8x32xf32>
    %242 = vector.shape_cast %241 : vector<1x8x32xf32> to vector<8x32xf32>
    %cst_106 = arith.constant dense<0.000000e+00> : vector<8x32xf32>
    %243 = tpu.matmul %229, %38, %cst_106 {dimension_numbers = #tpu.dot_dimension_numbers<[1], [0], [0], [1], [0, 0, 1, 1], [], []>} : vector<8x32xf32>, vector<32x32xf32>, vector<8x32xf32> -> vector<8x32xf32>
    %244 = arith.addf %242, %243 : vector<8x32xf32>
    %245 = vector.extract_strided_slice %46 {offsets = [4, 0, 0], sizes = [1, 8, 32], strides = [1, 1, 1]} : vector<8x8x32xf32> to vector<1x8x32xf32>
    %246 = vector.shape_cast %245 : vector<1x8x32xf32> to vector<8x32xf32>
    %cst_107 = arith.constant dense<0.000000e+00> : vector<8x32xf32>
    %247 = tpu.matmul %229, %48, %cst_107 {dimension_numbers = #tpu.dot_dimension_numbers<[1], [0], [0], [1], [0, 0, 1, 1], [], []>} : vector<8x32xf32>, vector<32x32xf32>, vector<8x32xf32> -> vector<8x32xf32>
    %248 = arith.addf %246, %247 : vector<8x32xf32>
    %cst_108 = arith.constant 5.000000e-01 : f32
    %249 = vector.broadcast %cst_108 : f32 to vector<8x32xf32>
    %250 = arith.mulf %249, %236 : vector<8x32xf32>
    %251 = math.tanh %250 : vector<8x32xf32>
    %cst_109 = arith.constant 5.000000e-01 : f32
    %252 = vector.broadcast %cst_109 : f32 to vector<8x32xf32>
    %253 = arith.mulf %252, %251 : vector<8x32xf32>
    %cst_110 = arith.constant 5.000000e-01 : f32
    %254 = vector.broadcast %cst_110 : f32 to vector<8x32xf32>
    %255 = arith.addf %253, %254 : vector<8x32xf32>
    %cst_111 = arith.constant 5.000000e-01 : f32
    %256 = vector.broadcast %cst_111 : f32 to vector<8x32xf32>
    %257 = arith.mulf %256, %240 : vector<8x32xf32>
    %258 = math.tanh %257 : vector<8x32xf32>
    %cst_112 = arith.constant 5.000000e-01 : f32
    %259 = vector.broadcast %cst_112 : f32 to vector<8x32xf32>
    %260 = arith.mulf %259, %258 : vector<8x32xf32>
    %cst_113 = arith.constant 5.000000e-01 : f32
    %261 = vector.broadcast %cst_113 : f32 to vector<8x32xf32>
    %262 = arith.addf %260, %261 : vector<8x32xf32>
    %263 = math.tanh %244 : vector<8x32xf32>
    %cst_114 = arith.constant 5.000000e-01 : f32
    %264 = vector.broadcast %cst_114 : f32 to vector<8x32xf32>
    %265 = arith.mulf %264, %248 : vector<8x32xf32>
    %266 = math.tanh %265 : vector<8x32xf32>
    %cst_115 = arith.constant 5.000000e-01 : f32
    %267 = vector.broadcast %cst_115 : f32 to vector<8x32xf32>
    %268 = arith.mulf %267, %266 : vector<8x32xf32>
    %cst_116 = arith.constant 5.000000e-01 : f32
    %269 = vector.broadcast %cst_116 : f32 to vector<8x32xf32>
    %270 = arith.addf %268, %269 : vector<8x32xf32>
    %271 = arith.mulf %262, %227 : vector<8x32xf32>
    %272 = arith.mulf %255, %263 : vector<8x32xf32>
    %273 = arith.addf %271, %272 : vector<8x32xf32>
    %274 = math.tanh %273 : vector<8x32xf32>
    %275 = arith.mulf %270, %274 : vector<8x32xf32>
    %c0_117 = arith.constant 0 : index
    %c128 = arith.constant 128 : index
    %276 = vector.load %arg6[%c0_117, %c128] : memref<8x256xf32, #tpu.memory_space<vmem>>, vector<8x32xf32>
    tpu.vector_store %arg6[%c0_117, %c128], %275 {strides = array<i32>} : memref<8x256xf32, #tpu.memory_space<vmem>>, vector<8x32xf32>,
    %277 = arith.maximumf %231, %275 : vector<8x32xf32>
    %278 = arith.addf %232, %275 : vector<8x32xf32>
    %279 = vector.extract_strided_slice %16 {offsets = [5, 0, 0], sizes = [1, 8, 32], strides = [1, 1, 1]} : vector<8x8x32xf32> to vector<1x8x32xf32>
    %280 = vector.shape_cast %279 : vector<1x8x32xf32> to vector<8x32xf32>
    %cst_118 = arith.constant dense<0.000000e+00> : vector<8x32xf32>
    %281 = tpu.matmul %275, %18, %cst_118 {dimension_numbers = #tpu.dot_dimension_numbers<[1], [0], [0], [1], [0, 0, 1, 1], [], []>} : vector<8x32xf32>, vector<32x32xf32>, vector<8x32xf32> -> vector<8x32xf32>
    %282 = arith.addf %280, %281 : vector<8x32xf32>
    %283 = vector.extract_strided_slice %26 {offsets = [5, 0, 0], sizes = [1, 8, 32], strides = [1, 1, 1]} : vector<8x8x32xf32> to vector<1x8x32xf32>
    %284 = vector.shape_cast %283 : vector<1x8x32xf32> to vector<8x32xf32>
    %cst_119 = arith.constant dense<0.000000e+00> : vector<8x32xf32>
    %285 = tpu.matmul %275, %28, %cst_119 {dimension_numbers = #tpu.dot_dimension_numbers<[1], [0], [0], [1], [0, 0, 1, 1], [], []>} : vector<8x32xf32>, vector<32x32xf32>, vector<8x32xf32> -> vector<8x32xf32>
    %286 = arith.addf %284, %285 : vector<8x32xf32>
    %287 = vector.extract_strided_slice %36 {offsets = [5, 0, 0], sizes = [1, 8, 32], strides = [1, 1, 1]} : vector<8x8x32xf32> to vector<1x8x32xf32>
    %288 = vector.shape_cast %287 : vector<1x8x32xf32> to vector<8x32xf32>
    %cst_120 = arith.constant dense<0.000000e+00> : vector<8x32xf32>
    %289 = tpu.matmul %275, %38, %cst_120 {dimension_numbers = #tpu.dot_dimension_numbers<[1], [0], [0], [1], [0, 0, 1, 1], [], []>} : vector<8x32xf32>, vector<32x32xf32>, vector<8x32xf32> -> vector<8x32xf32>
    %290 = arith.addf %288, %289 : vector<8x32xf32>
    %291 = vector.extract_strided_slice %46 {offsets = [5, 0, 0], sizes = [1, 8, 32], strides = [1, 1, 1]} : vector<8x8x32xf32> to vector<1x8x32xf32>
    %292 = vector.shape_cast %291 : vector<1x8x32xf32> to vector<8x32xf32>
    %cst_121 = arith.constant dense<0.000000e+00> : vector<8x32xf32>
    %293 = tpu.matmul %275, %48, %cst_121 {dimension_numbers = #tpu.dot_dimension_numbers<[1], [0], [0], [1], [0, 0, 1, 1], [], []>} : vector<8x32xf32>, vector<32x32xf32>, vector<8x32xf32> -> vector<8x32xf32>
    %294 = arith.addf %292, %293 : vector<8x32xf32>
    %cst_122 = arith.constant 5.000000e-01 : f32
    %295 = vector.broadcast %cst_122 : f32 to vector<8x32xf32>
    %296 = arith.mulf %295, %282 : vector<8x32xf32>
    %297 = math.tanh %296 : vector<8x32xf32>
    %cst_123 = arith.constant 5.000000e-01 : f32
    %298 = vector.broadcast %cst_123 : f32 to vector<8x32xf32>
    %299 = arith.mulf %298, %297 : vector<8x32xf32>
    %cst_124 = arith.constant 5.000000e-01 : f32
    %300 = vector.broadcast %cst_124 : f32 to vector<8x32xf32>
    %301 = arith.addf %299, %300 : vector<8x32xf32>
    %cst_125 = arith.constant 5.000000e-01 : f32
    %302 = vector.broadcast %cst_125 : f32 to vector<8x32xf32>
    %303 = arith.mulf %302, %286 : vector<8x32xf32>
    %304 = math.tanh %303 : vector<8x32xf32>
    %cst_126 = arith.constant 5.000000e-01 : f32
    %305 = vector.broadcast %cst_126 : f32 to vector<8x32xf32>
    %306 = arith.mulf %305, %304 : vector<8x32xf32>
    %cst_127 = arith.constant 5.000000e-01 : f32
    %307 = vector.broadcast %cst_127 : f32 to vector<8x32xf32>
    %308 = arith.addf %306, %307 : vector<8x32xf32>
    %309 = math.tanh %290 : vector<8x32xf32>
    %cst_128 = arith.constant 5.000000e-01 : f32
    %310 = vector.broadcast %cst_128 : f32 to vector<8x32xf32>
    %311 = arith.mulf %310, %294 : vector<8x32xf32>
    %312 = math.tanh %311 : vector<8x32xf32>
    %cst_129 = arith.constant 5.000000e-01 : f32
    %313 = vector.broadcast %cst_129 : f32 to vector<8x32xf32>
    %314 = arith.mulf %313, %312 : vector<8x32xf32>
    %cst_130 = arith.constant 5.000000e-01 : f32
    %315 = vector.broadcast %cst_130 : f32 to vector<8x32xf32>
    %316 = arith.addf %314, %315 : vector<8x32xf32>
    %317 = arith.mulf %308, %273 : vector<8x32xf32>
    %318 = arith.mulf %301, %309 : vector<8x32xf32>
    %319 = arith.addf %317, %318 : vector<8x32xf32>
    %320 = math.tanh %319 : vector<8x32xf32>
    %321 = arith.mulf %316, %320 : vector<8x32xf32>
    %c0_131 = arith.constant 0 : index
    %c160 = arith.constant 160 : index
    %322 = vector.load %arg6[%c0_131, %c160] : memref<8x256xf32, #tpu.memory_space<vmem>>, vector<8x32xf32>
    tpu.vector_store %arg6[%c0_131, %c160], %321 {strides = array<i32>} : memref<8x256xf32, #tpu.memory_space<vmem>>, vector<8x32xf32>,
    %323 = arith.maximumf %277, %321 : vector<8x32xf32>
    %324 = arith.addf %278, %321 : vector<8x32xf32>
    %325 = vector.extract_strided_slice %16 {offsets = [6, 0, 0], sizes = [1, 8, 32], strides = [1, 1, 1]} : vector<8x8x32xf32> to vector<1x8x32xf32>
    %326 = vector.shape_cast %325 : vector<1x8x32xf32> to vector<8x32xf32>
    %cst_132 = arith.constant dense<0.000000e+00> : vector<8x32xf32>
    %327 = tpu.matmul %321, %18, %cst_132 {dimension_numbers = #tpu.dot_dimension_numbers<[1], [0], [0], [1], [0, 0, 1, 1], [], []>} : vector<8x32xf32>, vector<32x32xf32>, vector<8x32xf32> -> vector<8x32xf32>
    %328 = arith.addf %326, %327 : vector<8x32xf32>
    %329 = vector.extract_strided_slice %26 {offsets = [6, 0, 0], sizes = [1, 8, 32], strides = [1, 1, 1]} : vector<8x8x32xf32> to vector<1x8x32xf32>
    %330 = vector.shape_cast %329 : vector<1x8x32xf32> to vector<8x32xf32>
    %cst_133 = arith.constant dense<0.000000e+00> : vector<8x32xf32>
    %331 = tpu.matmul %321, %28, %cst_133 {dimension_numbers = #tpu.dot_dimension_numbers<[1], [0], [0], [1], [0, 0, 1, 1], [], []>} : vector<8x32xf32>, vector<32x32xf32>, vector<8x32xf32> -> vector<8x32xf32>
    %332 = arith.addf %330, %331 : vector<8x32xf32>
    %333 = vector.extract_strided_slice %36 {offsets = [6, 0, 0], sizes = [1, 8, 32], strides = [1, 1, 1]} : vector<8x8x32xf32> to vector<1x8x32xf32>
    %334 = vector.shape_cast %333 : vector<1x8x32xf32> to vector<8x32xf32>
    %cst_134 = arith.constant dense<0.000000e+00> : vector<8x32xf32>
    %335 = tpu.matmul %321, %38, %cst_134 {dimension_numbers = #tpu.dot_dimension_numbers<[1], [0], [0], [1], [0, 0, 1, 1], [], []>} : vector<8x32xf32>, vector<32x32xf32>, vector<8x32xf32> -> vector<8x32xf32>
    %336 = arith.addf %334, %335 : vector<8x32xf32>
    %337 = vector.extract_strided_slice %46 {offsets = [6, 0, 0], sizes = [1, 8, 32], strides = [1, 1, 1]} : vector<8x8x32xf32> to vector<1x8x32xf32>
    %338 = vector.shape_cast %337 : vector<1x8x32xf32> to vector<8x32xf32>
    %cst_135 = arith.constant dense<0.000000e+00> : vector<8x32xf32>
    %339 = tpu.matmul %321, %48, %cst_135 {dimension_numbers = #tpu.dot_dimension_numbers<[1], [0], [0], [1], [0, 0, 1, 1], [], []>} : vector<8x32xf32>, vector<32x32xf32>, vector<8x32xf32> -> vector<8x32xf32>
    %340 = arith.addf %338, %339 : vector<8x32xf32>
    %cst_136 = arith.constant 5.000000e-01 : f32
    %341 = vector.broadcast %cst_136 : f32 to vector<8x32xf32>
    %342 = arith.mulf %341, %328 : vector<8x32xf32>
    %343 = math.tanh %342 : vector<8x32xf32>
    %cst_137 = arith.constant 5.000000e-01 : f32
    %344 = vector.broadcast %cst_137 : f32 to vector<8x32xf32>
    %345 = arith.mulf %344, %343 : vector<8x32xf32>
    %cst_138 = arith.constant 5.000000e-01 : f32
    %346 = vector.broadcast %cst_138 : f32 to vector<8x32xf32>
    %347 = arith.addf %345, %346 : vector<8x32xf32>
    %cst_139 = arith.constant 5.000000e-01 : f32
    %348 = vector.broadcast %cst_139 : f32 to vector<8x32xf32>
    %349 = arith.mulf %348, %332 : vector<8x32xf32>
    %350 = math.tanh %349 : vector<8x32xf32>
    %cst_140 = arith.constant 5.000000e-01 : f32
    %351 = vector.broadcast %cst_140 : f32 to vector<8x32xf32>
    %352 = arith.mulf %351, %350 : vector<8x32xf32>
    %cst_141 = arith.constant 5.000000e-01 : f32
    %353 = vector.broadcast %cst_141 : f32 to vector<8x32xf32>
    %354 = arith.addf %352, %353 : vector<8x32xf32>
    %355 = math.tanh %336 : vector<8x32xf32>
    %cst_142 = arith.constant 5.000000e-01 : f32
    %356 = vector.broadcast %cst_142 : f32 to vector<8x32xf32>
    %357 = arith.mulf %356, %340 : vector<8x32xf32>
    %358 = math.tanh %357 : vector<8x32xf32>
    %cst_143 = arith.constant 5.000000e-01 : f32
    %359 = vector.broadcast %cst_143 : f32 to vector<8x32xf32>
    %360 = arith.mulf %359, %358 : vector<8x32xf32>
    %cst_144 = arith.constant 5.000000e-01 : f32
    %361 = vector.broadcast %cst_144 : f32 to vector<8x32xf32>
    %362 = arith.addf %360, %361 : vector<8x32xf32>
    %363 = arith.mulf %354, %319 : vector<8x32xf32>
    %364 = arith.mulf %347, %355 : vector<8x32xf32>
    %365 = arith.addf %363, %364 : vector<8x32xf32>
    %366 = math.tanh %365 : vector<8x32xf32>
    %367 = arith.mulf %362, %366 : vector<8x32xf32>
    %c0_145 = arith.constant 0 : index
    %c192 = arith.constant 192 : index
    %368 = vector.load %arg6[%c0_145, %c192] : memref<8x256xf32, #tpu.memory_space<vmem>>, vector<8x32xf32>
    tpu.vector_store %arg6[%c0_145, %c192], %367 {strides = array<i32>} : memref<8x256xf32, #tpu.memory_space<vmem>>, vector<8x32xf32>,
    %369 = arith.maximumf %323, %367 : vector<8x32xf32>
    %370 = arith.addf %324, %367 : vector<8x32xf32>
    %371 = vector.extract_strided_slice %16 {offsets = [7, 0, 0], sizes = [1, 8, 32], strides = [1, 1, 1]} : vector<8x8x32xf32> to vector<1x8x32xf32>
    %372 = vector.shape_cast %371 : vector<1x8x32xf32> to vector<8x32xf32>
    %cst_146 = arith.constant dense<0.000000e+00> : vector<8x32xf32>
    %373 = tpu.matmul %367, %18, %cst_146 {dimension_numbers = #tpu.dot_dimension_numbers<[1], [0], [0], [1], [0, 0, 1, 1], [], []>} : vector<8x32xf32>, vector<32x32xf32>, vector<8x32xf32> -> vector<8x32xf32>
    %374 = arith.addf %372, %373 : vector<8x32xf32>
    %375 = vector.extract_strided_slice %26 {offsets = [7, 0, 0], sizes = [1, 8, 32], strides = [1, 1, 1]} : vector<8x8x32xf32> to vector<1x8x32xf32>
    %376 = vector.shape_cast %375 : vector<1x8x32xf32> to vector<8x32xf32>
    %cst_147 = arith.constant dense<0.000000e+00> : vector<8x32xf32>
    %377 = tpu.matmul %367, %28, %cst_147 {dimension_numbers = #tpu.dot_dimension_numbers<[1], [0], [0], [1], [0, 0, 1, 1], [], []>} : vector<8x32xf32>, vector<32x32xf32>, vector<8x32xf32> -> vector<8x32xf32>
    %378 = arith.addf %376, %377 : vector<8x32xf32>
    %379 = vector.extract_strided_slice %36 {offsets = [7, 0, 0], sizes = [1, 8, 32], strides = [1, 1, 1]} : vector<8x8x32xf32> to vector<1x8x32xf32>
    %380 = vector.shape_cast %379 : vector<1x8x32xf32> to vector<8x32xf32>
    %cst_148 = arith.constant dense<0.000000e+00> : vector<8x32xf32>
    %381 = tpu.matmul %367, %38, %cst_148 {dimension_numbers = #tpu.dot_dimension_numbers<[1], [0], [0], [1], [0, 0, 1, 1], [], []>} : vector<8x32xf32>, vector<32x32xf32>, vector<8x32xf32> -> vector<8x32xf32>
    %382 = arith.addf %380, %381 : vector<8x32xf32>
    %383 = vector.extract_strided_slice %46 {offsets = [7, 0, 0], sizes = [1, 8, 32], strides = [1, 1, 1]} : vector<8x8x32xf32> to vector<1x8x32xf32>
    %384 = vector.shape_cast %383 : vector<1x8x32xf32> to vector<8x32xf32>
    %cst_149 = arith.constant dense<0.000000e+00> : vector<8x32xf32>
    %385 = tpu.matmul %367, %48, %cst_149 {dimension_numbers = #tpu.dot_dimension_numbers<[1], [0], [0], [1], [0, 0, 1, 1], [], []>} : vector<8x32xf32>, vector<32x32xf32>, vector<8x32xf32> -> vector<8x32xf32>
    %386 = arith.addf %384, %385 : vector<8x32xf32>
    %cst_150 = arith.constant 5.000000e-01 : f32
    %387 = vector.broadcast %cst_150 : f32 to vector<8x32xf32>
    %388 = arith.mulf %387, %374 : vector<8x32xf32>
    %389 = math.tanh %388 : vector<8x32xf32>
    %cst_151 = arith.constant 5.000000e-01 : f32
    %390 = vector.broadcast %cst_151 : f32 to vector<8x32xf32>
    %391 = arith.mulf %390, %389 : vector<8x32xf32>
    %cst_152 = arith.constant 5.000000e-01 : f32
    %392 = vector.broadcast %cst_152 : f32 to vector<8x32xf32>
    %393 = arith.addf %391, %392 : vector<8x32xf32>
    %cst_153 = arith.constant 5.000000e-01 : f32
    %394 = vector.broadcast %cst_153 : f32 to vector<8x32xf32>
    %395 = arith.mulf %394, %378 : vector<8x32xf32>
    %396 = math.tanh %395 : vector<8x32xf32>
    %cst_154 = arith.constant 5.000000e-01 : f32
    %397 = vector.broadcast %cst_154 : f32 to vector<8x32xf32>
    %398 = arith.mulf %397, %396 : vector<8x32xf32>
    %cst_155 = arith.constant 5.000000e-01 : f32
    %399 = vector.broadcast %cst_155 : f32 to vector<8x32xf32>
    %400 = arith.addf %398, %399 : vector<8x32xf32>
    %401 = math.tanh %382 : vector<8x32xf32>
    %cst_156 = arith.constant 5.000000e-01 : f32
    %402 = vector.broadcast %cst_156 : f32 to vector<8x32xf32>
    %403 = arith.mulf %402, %386 : vector<8x32xf32>
    %404 = math.tanh %403 : vector<8x32xf32>
    %cst_157 = arith.constant 5.000000e-01 : f32
    %405 = vector.broadcast %cst_157 : f32 to vector<8x32xf32>
    %406 = arith.mulf %405, %404 : vector<8x32xf32>
    %cst_158 = arith.constant 5.000000e-01 : f32
    %407 = vector.broadcast %cst_158 : f32 to vector<8x32xf32>
    %408 = arith.addf %406, %407 : vector<8x32xf32>
    %409 = arith.mulf %400, %365 : vector<8x32xf32>
    %410 = arith.mulf %393, %401 : vector<8x32xf32>
    %411 = arith.addf %409, %410 : vector<8x32xf32>
    %412 = math.tanh %411 : vector<8x32xf32>
    %413 = arith.mulf %408, %412 : vector<8x32xf32>
    %c0_159 = arith.constant 0 : index
    %c224 = arith.constant 224 : index
    %414 = vector.load %arg6[%c0_159, %c224] : memref<8x256xf32, #tpu.memory_space<vmem>>, vector<8x32xf32>
    tpu.vector_store %arg6[%c0_159, %c224], %413 {strides = array<i32>} : memref<8x256xf32, #tpu.memory_space<vmem>>, vector<8x32xf32>,
    %415 = arith.maximumf %369, %413 : vector<8x32xf32>
    %416 = arith.addf %370, %413 : vector<8x32xf32>
    %c0_160 = arith.constant 0 : index
    %c0_161 = arith.constant 0 : index
    %417 = vector.load %arg8[%c0_160, %c0_161] : memref<8x32xf32, #tpu.memory_space<vmem>>, vector<8x32xf32>
    tpu.vector_store %arg8[%c0_160, %c0_161], %413 {strides = array<i32>} : memref<8x32xf32, #tpu.memory_space<vmem>>, vector<8x32xf32>,
    %c0_162 = arith.constant 0 : index
    %c0_163 = arith.constant 0 : index
    %418 = vector.load %arg9[%c0_162, %c0_163] : memref<8x32xf32, #tpu.memory_space<vmem>>, vector<8x32xf32>
    tpu.vector_store %arg9[%c0_162, %c0_163], %411 {strides = array<i32>} : memref<8x32xf32, #tpu.memory_space<vmem>>, vector<8x32xf32>,
    %c0_164 = arith.constant 0 : index
    %c0_165 = arith.constant 0 : index
    %419 = vector.load %arg10[%c0_164, %c0_165] : memref<8x32xf32, #tpu.memory_space<vmem>>, vector<8x32xf32>
    tpu.vector_store %arg10[%c0_164, %c0_165], %415 {strides = array<i32>} : memref<8x32xf32, #tpu.memory_space<vmem>>, vector<8x32xf32>,
    %c0_166 = arith.constant 0 : index
    %c0_167 = arith.constant 0 : index
    %420 = vector.load %arg11[%c0_166, %c0_167] : memref<8x32xf32, #tpu.memory_space<vmem>>, vector<8x32xf32>
    tpu.vector_store %arg11[%c0_166, %c0_167], %416 {strides = array<i32>} : memref<8x32xf32, #tpu.memory_space<vmem>>, vector<8x32xf32>,
    %c0_i32_168 = arith.constant 0 : i32
    %421 = arith.cmpi eq, %arg1, %c0_i32_168 : i32
    %422 = arith.extui %421 : i1 to i32
    %c0_i32_169 = arith.constant 0 : i32
    %423 = arith.cmpi ne, %422, %c0_i32_169 : i32
    scf.if %423 {
      %cst_170 = arith.constant 1.250000e-01 : f32
      %424 = vector.broadcast %cst_170 : f32 to vector<8x32xf32>
      %425 = arith.mulf %416, %424 : vector<8x32xf32>
      %426 = tpu.concatenate %413, %415, %425 in 1 : vector<8x32xf32>, vector<8x32xf32>, vector<8x32xf32> -> vector<8x96xf32>
      %c0_171 = arith.constant 0 : index
      %c0_172 = arith.constant 0 : index
      %427 = vector.load %arg7[%c0_171, %c0_172] : memref<8x96xf32, #tpu.memory_space<vmem>>, vector<8x96xf32>
      tpu.vector_store %arg7[%c0_171, %c0_172], %426 {strides = array<i32>} : memref<8x96xf32, #tpu.memory_space<vmem>>, vector<8x96xf32>,
    } else {
    }
    return
  }
  func.func @transform_0(%arg0: i32, %arg1: i32) -> (i32, i32, i32) {
    %c0_i32 = arith.constant 0 : i32
    %c0_i32_0 = arith.constant 0 : i32
    return %arg1, %arg0, %c0_i32 : i32, i32, i32
  }
  func.func @transform_1(%arg0: i32, %arg1: i32) -> (i32, i32, i32) {
    %c0_i32 = arith.constant 0 : i32
    %c0_i32_0 = arith.constant 0 : i32
    %c0_i32_1 = arith.constant 0 : i32
    %c0_i32_2 = arith.constant 0 : i32
    return %c0_i32, %c0_i32_0, %c0_i32_1 : i32, i32, i32
  }
  func.func @transform_2(%arg0: i32, %arg1: i32) -> (i32, i32, i32) {
    %c0_i32 = arith.constant 0 : i32
    %c0_i32_0 = arith.constant 0 : i32
    %c0_i32_1 = arith.constant 0 : i32
    %c0_i32_2 = arith.constant 0 : i32
    return %c0_i32, %c0_i32_0, %c0_i32_1 : i32, i32, i32
  }
  func.func @transform_3(%arg0: i32, %arg1: i32) -> (i32, i32, i32) {
    %c0_i32 = arith.constant 0 : i32
    %c0_i32_0 = arith.constant 0 : i32
    %c0_i32_1 = arith.constant 0 : i32
    %c0_i32_2 = arith.constant 0 : i32
    return %c0_i32, %c0_i32_0, %c0_i32_1 : i32, i32, i32
  }
  func.func @transform_4(%arg0: i32, %arg1: i32) -> (i32, i32) {
    %c0_i32 = arith.constant 0 : i32
    return %arg0, %arg1 : i32, i32
  }
  func.func @transform_5(%arg0: i32, %arg1: i32) -> (i32, i32) {
    %c0_i32 = arith.constant 0 : i32
    %c0_i32_0 = arith.constant 0 : i32
    return %arg0, %c0_i32 : i32, i32
  }
}

</mosaic_0001>

<bundles_post_ra>
// kernel: glove_model_forward.1
= control target key start
LH: loop header
LB: loop body
LE: loop exit
PB: predicated region body
PF: predicated region fallthrough
CT: control target
= control target key end

     0   :  { %vm23_vm0 = vcmask 261120   ;;  %v4115_v3 = vmov 0.0   ;;  %v4116_v32 = vmov 0.0|0.0   ;;  %vm4117_vm1 = vmmov 0   ;;  %s4119_s27 = smov 32   ;;  %s4120_s30 = smov 64   ;;  %s4786_s1 = inlined_call_operand.vmem [shape: f32[4,32,32], index: 1, kind: input, shape index: {}]   ;;  %s4787_s0 = inlined_call_operand.vmem [shape: f32[8,8,32], index: 0, kind: input, shape index: {}]   ;;  %s4788_s2 = inlined_call_operand.vmem [shape: f32[4,32,32], index: 2, kind: input, shape index: {}]   ;;  %s4789_s3 = inlined_call_operand.vmem [shape: f32[4,1,32], index: 3, kind: input, shape index: {}]   ;;  %s4790_s4 = inlined_call_operand.vmem [shape: f32[8,256], index: 4, kind: output, shape index: {0}]   ;;  %s4791_s5 = inlined_call_operand.vmem [shape: f32[8,96], index: 5, kind: output, shape index: {1}]  }
   0x1   :  { %v40_v0 = vld [vmem:[%s4786_s1] sm:$0xff]  ;;  %v41_v1 = vld [vmem:[%s4786_s1 + $0x8] sm:$0xff]  ;;  %24 = vst.msk [vmem:[#allocation2] sm:$0xff] %vm23_vm0, %v4115_v3  ;;  %25 = vst.msk [vmem:[#allocation3] sm:$0xff] %vm23_vm0, %v4115_v3  ;;  %v4118_v59 = vmov -inf   ;;  %vm1171_vm2 = vcmask 523520  }
   0x2   :  { %v3078_v2 = vld [vmem:[%s4786_s1 + $0x20] sm:$0xff]  ;;  %27 = vst.msk [vmem:[#allocation5] sm:$0xff] %vm23_vm0, %v4115_v3  ;;  %v3804_v4 = vpack.c.bf16 %v41_v1, %v40_v0  ;;  %v3079_v5 = vld [vmem:[%s4786_s1 + $0x28] sm:$0xff]  ;;  %v42_v6 = vld [vmem:[%s4786_s1 + $0x10] sm:$0xff]  ;;  %vm1483_vm3 = vcmask 785920   ;;  %s4121_s11 = smov 96  }
   0x3   :  { %v43_v7 = vld [vmem:[%s4786_s1 + $0x18] sm:$0xff]  ;;  %v3812_v8 = vpack.c.bf16 %v3079_v5, %v3078_v2  ;;  %v3080_v10 = vld [vmem:[%s4786_s1 + $0x30] sm:$0xff]  ;;  %v4185_v12 = vld [vmem:[%s4787_s0] sm:$0xff]  ;;  %26 = vst.msk [vmem:[#allocation4] sm:$0xff] %vm23_vm0, %v4118_v59  ;;  %vm1795_vm4 = vcmask 1048320   ;;  %vm3057_vm5 = vcmask 523264  }
   0x4   :  { %v3808_v9 = vpack.c.bf16 %v43_v7, %v42_v6  ;;  %v3081_v11 = vld [vmem:[%s4786_s1 + $0x38] sm:$0xff]  ;;  %3805 = vmatprep.subr.bf16.mxu0 %v3804_v4  ;;  %3380 = vmatprep.mubr.msk.f32.mxu0 %vm23_vm0, %v4185_v12  ;;  %v3096_v14 = vld [vmem:[%s4786_s1 + $0x40] sm:$0xff]  ;;  %v3097_v15 = vld [vmem:[%s4786_s1 + $0x48] sm:$0xff]  ;;  %vm3059_vm6 = vcmask 785408  }
   0x5   :  { %v3816_v13 = vpack.c.bf16 %v3081_v11, %v3080_v10  ;;  %3813 = vmatprep.subr.bf16.mxu1 %v3812_v8  ;;  %3807 = vmatpush3.bf16.msra.mxu0 %v3804_v4  ;;  %v3114_v16 = vld [vmem:[%s4786_s1 + $0x60] sm:$0xff]  ;;  %v3115_v17 = vld [vmem:[%s4786_s1 + $0x68] sm:$0xff]  ;;  %v3820_v18 = vpack.c.bf16 %v3097_v15, %v3096_v14  ;;  %v3098_v20 = vld [vmem:[%s4786_s1 + $0x50] sm:$0xff] }
   0x6   :  { %3815 = vmatpush3.bf16.msra.mxu1 %v3812_v8  ;;  %3809 = vmatprep.subr.bf16.mxu0 %v3808_v9  ;;  %v3828_v19 = vpack.c.bf16 %v3115_v17, %v3114_v16  ;;  %v3099_v21 = vld [vmem:[%s4786_s1 + $0x58] sm:$0xff]  ;;  %v33_v22 = vld [vmem:[%s4787_s0 + $0x8] sm:$0xff]  ;;  %v3116_v23 = vld [vmem:[%s4786_s1 + $0x70] sm:$0xff] }
   0x7   :  { %3817 = vmatprep.subr.bf16.mxu1 %v3816_v13  ;;  %3400 = vmatprep.mubr.msk.f32.mxu1 %vm23_vm0, %v4185_v12  ;;  %v3117_v24 = vld [vmem:[%s4786_s1 + $0x78] sm:$0xff]  ;;  %v34_v25 = vld [vmem:[%s4787_s0 + $0x10] sm:$0xff]  ;;  %v3824_v26 = vpack.c.bf16 %v3099_v21, %v3098_v20  ;;  %v36_v29 = vld [vmem:[%s4787_s0 + $0x20] sm:$0xff] }
   0x8   :  { %v3832_v27 = vpack.c.bf16 %v3117_v24, %v3116_v23  ;;  %v35_v28 = vld [vmem:[%s4787_s0 + $0x18] sm:$0xff]  ;;  %v37_v30 = vld [vmem:[%s4787_s0 + $0x28] sm:$0xff]  ;;  %v38_v31 = vld [vmem:[%s4787_s0 + $0x30] sm:$0xff] }
   0x9   :  { %3811 = vmatpush3.bf16.msra.mxu0 %v3808_v9  ;;  %v39_v33 = vld [vmem:[%s4787_s0 + $0x38] sm:$0xff]  ;;  %v181_v34 = vld [vmem:[%s4788_s2] sm:$0xff]  ;;  %v182_v35 = vld [vmem:[%s4788_s2 + $0x8] sm:$0xff] }
   0xa   :  { %3819 = vmatpush3.bf16.msra.mxu1 %v3816_v13  ;;  %3821 = vmatprep.subr.bf16.mxu0 %v3820_v18  ;;  %v3092_v36 = vld [vmem:[%s4788_s2 + $0x20] sm:$0xff]  ;;  %v3093_v37 = vld [vmem:[%s4788_s2 + $0x28] sm:$0xff]  ;;  %v4266_v38 = vpack.c.bf16 %v182_v35, %v181_v34  ;;  %v183_v40 = vld [vmem:[%s4788_s2 + $0x10] sm:$0xff] }
   0xb   :  { %3829 = vmatprep.subr.bf16.mxu1 %v3828_v19  ;;  %v4270_v39 = vpack.c.bf16 %v3093_v37, %v3092_v36  ;;  %v184_v41 = vld [vmem:[%s4788_s2 + $0x18] sm:$0xff]  ;;  %v3094_v42 = vld [vmem:[%s4788_s2 + $0x30] sm:$0xff]  ;;  %v3110_v46 = vld [vmem:[%s4788_s2 + $0x40] sm:$0xff] }
   0xc   :  { %3381 = vmatmul.mubr.msk.f32.vlgmr.msra.gmra.mrb[0].mxu0 %vm23_vm0, %v33_v22  ;;  %v3095_v43 = vld [vmem:[%s4788_s2 + $0x38] sm:$0xff]  ;;  %v4289_v44 = vpack.c.bf16 %v184_v41, %v183_v40  ;;  %v3111_v47 = vld [vmem:[%s4788_s2 + $0x48] sm:$0xff]  ;;  %v3128_v48 = vld [vmem:[%s4788_s2 + $0x60] sm:$0xff] }
   0xd   :  { %3401 = vmatmul.mubr.msk.f32.vlgmr.msra.gmra.mrb[0].mxu1 %vm23_vm0, %v33_v22  ;;  %3823 = vmatpush3.bf16.msra.mxu0 %v3820_v18  ;;  %v4293_v45 = vpack.c.bf16 %v3095_v43, %v3094_v42  ;;  %v3129_v49 = vld [vmem:[%s4788_s2 + $0x68] sm:$0xff]  ;;  %v28_v50 = vld [vmem:[#allocation2] sm:$0xff]  ;;  %v4324_v51 = vpack.c.bf16 %v3111_v47, %v3110_v46  ;;  %v3112_v53 = vld [vmem:[%s4788_s2 + $0x50] sm:$0xff] }
   0xe   :  { %3831 = vmatpush3.bf16.msra.mxu1 %v3828_v19  ;;  %3383 = vmatprep.mubr.msk.f32.mxu0 %vm23_vm0, %v34_v25  ;;  %v4328_v52 = vpack.c.bf16 %v3129_v49, %v3128_v48  ;;  %v3113_v54 = vld [vmem:[%s4788_s2 + $0x58] sm:$0xff]  ;;  %v3130_v55 = vld [vmem:[%s4788_s2 + $0x70] sm:$0xff]  ;;  %v4378_v60 = vld [vmem:[%s4789_s3] ss:$0 sm:$0xff] }
   0xf   :  { %3403 = vmatprep.mubr.msk.f32.mxu1 %vm23_vm0, %v34_v25  ;;  %3825 = vmatprep.subr.bf16.mxu0 %v3824_v26  ;;  %v3131_v56 = vld [vmem:[%s4788_s2 + $0x78] sm:$0xff]  ;;  %v4345_v57 = vpack.c.bf16 %v3113_v54, %v3112_v53  ;;  %v4383_v61 = vld [vmem:[%s4789_s3 + $0x1] ss:$0 sm:$0xff] }
  0x10   :  { %3384 = vmatmul.mubr.msk.f32.gmra.mrb[2].mxu0 %vm23_vm0, %v35_v28  ;;  %3833 = vmatprep.subr.bf16.mxu1 %v3832_v27  ;;  %v4349_v58 = vpack.c.bf16 %v3131_v56, %v3130_v55 }
  0x11   :  { %3404 = vmatmul.mubr.msk.f32.gmra.mrb[2].mxu1 %vm23_vm0, %v35_v28  ;;  %3386 = vmatprep.mubr.msk.f32.mxu0 %vm23_vm0, %v36_v29 }
  0x12   :  { %3406 = vmatprep.mubr.msk.f32.mxu1 %vm23_vm0, %v36_v29  ;;  %3827 = vmatpush3.bf16.msra.mxu0 %v3824_v26 }
  0x13   :  { %3835 = vmatpush3.bf16.msra.mxu1 %v3832_v27  ;;  %3836 = vmatprep.subr.bf16.mxu0 %v4116_v32 }
  0x14   :  { %3387 = vmatmul.mubr.msk.f32.gmra.mrb[4].mxu0 %vm23_vm0, %v37_v30  ;;  %3842 = vmatprep.subr.bf16.mxu1 %v4116_v32 }
  0x15   :  { %3407 = vmatmul.mubr.msk.f32.gmra.mrb[4].mxu1 %vm23_vm0, %v37_v30  ;;  %3389 = vmatprep.mubr.msk.f32.mxu0 %vm23_vm0, %v38_v31 }
  0x16   :  { %3409 = vmatprep.mubr.msk.f32.mxu1 %vm23_vm0, %v38_v31 }
  0x18   :  { %3390 = vmatmul.mubr.msk.f32.gmra.mrb[6].mxu0 %vm23_vm0, %v39_v33 }
  0x19   :  { %3410 = vmatmul.mubr.msk.f32.gmra.mrb[6].mxu1 %vm23_vm0, %v39_v33  ;;  %3420 = vmatprep.mubr.msk.f32.mxu0 %vm23_vm0, %v4185_v12 }
  0x1a   :  { %3440 = vmatprep.mubr.msk.f32.mxu1 %vm23_vm0, %v4185_v12 }
  0x1c   :  { %3421 = vmatmul.mubr.msk.f32.vlgmr.msra.gmra.mrb[8].mxu0 %vm23_vm0, %v33_v22 }
  0x1d   :  { %3441 = vmatmul.mubr.msk.f32.vlgmr.msra.gmra.mrb[8].mxu1 %vm23_vm0, %v33_v22  ;;  %3838 = vmatpush3.bf16.msra.mxu0 %v4266_v38 }
  0x1e   :  { %3844 = vmatpush3.bf16.msra.mxu1 %v4270_v39  ;;  %3423 = vmatprep.mubr.msk.f32.mxu0 %vm23_vm0, %v34_v25 }
  0x1f   :  { %3443 = vmatprep.mubr.msk.f32.mxu1 %vm23_vm0, %v34_v25  ;;  %3839 = vmatprep.subr.bf16.mxu0 %v4116_v32 }
  0x20   :  { %3424 = vmatmul.mubr.msk.f32.gmra.mrb[10].mxu0 %vm23_vm0, %v35_v28  ;;  %3845 = vmatprep.subr.bf16.mxu1 %v4116_v32 }
  0x21   :  { %3444 = vmatmul.mubr.msk.f32.gmra.mrb[10].mxu1 %vm23_vm0, %v35_v28  ;;  %3426 = vmatprep.mubr.msk.f32.mxu0 %vm23_vm0, %v36_v29  ;;  %v3101_v28 = vld [vmem:[%s4789_s3 + $0x2] ss:$0 sm:$0xff] }
  0x22   :  { %3446 = vmatprep.mubr.msk.f32.mxu1 %vm23_vm0, %v36_v29  ;;  %3841 = vmatpush3.bf16.msra.mxu0 %v4289_v44 }
  0x23   :  { %3847 = vmatpush3.bf16.msra.mxu1 %v4293_v45  ;;  %3848 = vmatprep.subr.bf16.mxu0 %v4116_v32 }
  0x24   :  { %3427 = vmatmul.mubr.msk.f32.gmra.mrb[12].mxu0 %vm23_vm0, %v37_v30  ;;  %3854 = vmatprep.subr.bf16.mxu1 %v4116_v32 }
  0x25   :  { %3447 = vmatmul.mubr.msk.f32.gmra.mrb[12].mxu1 %vm23_vm0, %v37_v30  ;;  %3429 = vmatprep.mubr.msk.f32.mxu0 %vm23_vm0, %v38_v31  ;;  %v3119_v30 = vld [vmem:[%s4789_s3 + $0x3] ss:$0 sm:$0xff] }
  0x26   :  { %3449 = vmatprep.mubr.msk.f32.mxu1 %vm23_vm0, %v38_v31 }
  0x28   :  { %3430 = vmatmul.mubr.msk.f32.gmra.mrb[14].mxu0 %vm23_vm0, %v39_v33 }
  0x29   :  { %3450 = vmatmul.mubr.msk.f32.gmra.mrb[14].mxu1 %vm23_vm0, %v39_v33  ;;  %3460 = vmatprep.mubr.msk.f32.mxu0 %vm4117_vm1, %v4115_v3 }
  0x2a   :  { %3471 = vmatprep.mubr.msk.f32.mxu1 %vm4117_vm1, %v4115_v3 }
  0x2c   :  { %3461 = vmatmul.mubr.msk.f32.vlgmr.msra.gmra.mrb[16].mxu0 %vm23_vm0, %v28_v50 }
  0x2d   :  { %3472 = vmatmul.mubr.msk.f32.vlgmr.msra.gmra.mrb[16].mxu1 %vm23_vm0, %v28_v50  ;;  %3850 = vmatpush3.bf16.msra.mxu0 %v4324_v51 }
  0x2e   :  { %3856 = vmatpush3.bf16.msra.mxu1 %v4328_v52  ;;  %3851 = vmatprep.subr.bf16.mxu0 %v4116_v32 }
  0x2f   :  { %3857 = vmatprep.subr.bf16.mxu1 %v4116_v32  ;;  %3482 = vmatprep.mubr.msk.f32.mxu0 %vm4117_vm1, %v4115_v3 }
  0x30   :  { %3493 = vmatprep.mubr.msk.f32.mxu1 %vm4117_vm1, %v4115_v3 }
  0x31   :  { %3853 = vmatpush3.bf16.msra.mxu0 %v4345_v57 }
  0x32   :  { %3859 = vmatpush3.bf16.msra.mxu1 %v4349_v58  ;;  %3860 = vmatprep.subr.bf16.mxu0 %v4116_v32 }
  0x33   :  { %3866 = vmatprep.subr.bf16.mxu1 %v4116_v32 }
  0x34   :  { %3483 = vmatmul.mubr.msk.f32.vlgmr.msra.gmra.mrb[18].mxu0 %vm23_vm0, %v28_v50 }
  0x35   :  { %3494 = vmatmul.mubr.msk.f32.vlgmr.msra.gmra.mrb[18].mxu1 %vm23_vm0, %v28_v50  ;;  %3862 = vmatpush3.bf16.msra.mxu0 %v4266_v38 }
  0x36   :  { %3868 = vmatpush3.bf16.msra.mxu1 %v4270_v39  ;;  %3863 = vmatprep.subr.bf16.mxu0 %v4116_v32 }
  0x37   :  { %3869 = vmatprep.subr.bf16.mxu1 %v4116_v32  ;;  %3504 = vmatprep.mubr.msk.f32.mxu0 %vm4117_vm1, %v4115_v3 }
  0x38   :  { %3515 = vmatprep.mubr.msk.f32.mxu1 %vm4117_vm1, %v4115_v3 }
  0x39   :  { %3865 = vmatpush3.bf16.msra.mxu0 %v4289_v44 }
  0x3a   :  { %3871 = vmatpush3.bf16.msra.mxu1 %v4293_v45  ;;  %3872 = vmatprep.subr.bf16.mxu0 %v4116_v32 }
  0x3b   :  { %3878 = vmatprep.subr.bf16.mxu1 %v4116_v32 }
  0xdf   :  { %v3382_v62 = vpop.f32.mrb[0].mxu0 }
  0xe0   :  { %v4386_v63 = vadd.f32 %v3382_v62, %v4378_v60  ;;  %v142_v0 = vpop.f32.mrb[1].mxu0  ;;  %v3402_v1 = vpop.f32.mrb[0].mxu1 }
  0xe1   :  { %v4389_v2 = vadd.f32 %v3402_v1, %v4383_v61  ;;  %v264_v4 = vpop.f32.mrb[1].mxu1 }
  0xe3   :  { %v3385_v5 = vpop.f32.mrb[2].mxu0 }
  0xe4   :  { %v4392_v6 = vadd.f32 %v3385_v5, %v4378_v60  ;;  %v152_v7 = vpop.f32.mrb[3].mxu0  ;;  %v3405_v8 = vpop.f32.mrb[2].mxu1 }
  0xe5   :  { %v4395_v9 = vadd.f32 %v4378_v60, %v152_v7  ;;  %v4398_v10 = vadd.f32 %v3405_v8, %v4383_v61  ;;  %v274_v11 = vpop.f32.mrb[3].mxu1 }
  0xe6   :  { %v4401_v12 = vadd.f32 %v4383_v61, %v274_v11 }
  0xe7   :  { %v3388_v13 = vpop.f32.mrb[4].mxu0 }
  0xe8   :  { %v4404_v14 = vadd.f32 %v3388_v13, %v4378_v60  ;;  %v162_v15 = vpop.f32.mrb[5].mxu0  ;;  %v3408_v16 = vpop.f32.mrb[4].mxu1 }
  0xe9   :  { %v4407_v17 = vadd.f32 %v4378_v60, %v162_v15  ;;  %v4410_v18 = vadd.f32 %v3408_v16, %v4383_v61  ;;  %v284_v19 = vpop.f32.mrb[5].mxu1 }
  0xea   :  { %v4413_v20 = vadd.f32 %v4383_v61, %v284_v19  ;;  %v143_v19 = vadd.f32 %v4378_v60, %v142_v0 }
  0xeb   :  { %v3391_v21 = vpop.f32.mrb[6].mxu0 }
  0xec   :  { %v4416_v22 = vadd.f32 %v3391_v21, %v4378_v60  ;;  %v172_v23 = vpop.f32.mrb[7].mxu0  ;;  %v3411_v24 = vpop.f32.mrb[6].mxu1 }
  0xed   :  { %v4419_v25 = vadd.f32 %v4378_v60, %v172_v23  ;;  %v4422_v26 = vadd.f32 %v3411_v24, %v4383_v61  ;;  %v294_v27 = vpop.f32.mrb[7].mxu1  ;;  %v265_v23 = vadd.f32 %v4383_v61, %v264_v4 }
  0xee   :  { %v4428_v29 = vadd.f32 %v4383_v61, %v294_v27 }
  0xef   :  { %v3422_v31 = vpop.f32.mrb[8].mxu0 }
  0xf0   :  { %v4433_v33 = vadd.f32 %v3422_v31, %v3101_v28  ;;  %v387_v34 = vpop.f32.mrb[9].mxu0  ;;  %v3442_v35 = vpop.f32.mrb[8].mxu1 }
  0xf1   :  { %v4435_v36 = vadd.f32 %v3442_v35, %v3119_v30  ;;  %v510_v37 = vpop.f32.mrb[9].mxu1 }
  0xf3   :  { %v3425_v40 = vpop.f32.mrb[10].mxu0 }
  0xf4   :  { %v4437_v41 = vadd.f32 %v3425_v40, %v3101_v28  ;;  %v397_v42 = vpop.f32.mrb[11].mxu0  ;;  %v3445_v43 = vpop.f32.mrb[10].mxu1 }
  0xf5   :  { %v4439_v46 = vadd.f32 %v3101_v28, %v397_v42  ;;  %v4441_v47 = vadd.f32 %v3445_v43, %v3119_v30  ;;  %v520_v48 = vpop.f32.mrb[11].mxu1 }
  0xf6   :  { %v4443_v49 = vadd.f32 %v3119_v30, %v520_v48 }
  0xf7   :  { %v3428_v50 = vpop.f32.mrb[12].mxu0 }
  0xf8   :  { %v4445_v53 = vadd.f32 %v3428_v50, %v3101_v28  ;;  %v407_v54 = vpop.f32.mrb[13].mxu0  ;;  %v3448_v55 = vpop.f32.mrb[12].mxu1  ;;  %v388_v50 = vadd.f32 %v3101_v28, %v387_v34 }
  0xf9   :  { %v4447_v56 = vadd.f32 %v3101_v28, %v407_v54  ;;  %v4449_v59 = vadd.f32 %v3448_v55, %v3119_v30  ;;  %v530_v62 = vpop.f32.mrb[13].mxu1  ;;  %v511_v54 = vadd.f32 %v3119_v30, %v510_v37 }
  0xfa   :  { %v4451_v1 = vadd.f32 %v3119_v30, %v530_v62 }
  0xfb   :  { %v3431_v5 = vpop.f32.mrb[14].mxu0 }
  0xfc   :  { %v4453_v7 = vadd.f32 %v3431_v5, %v3101_v28  ;;  %v417_v8 = vpop.f32.mrb[15].mxu0  ;;  %v3451_v11 = vpop.f32.mrb[14].mxu1 }
  0xfd   :  { %v4455_v13 = vadd.f32 %v3101_v28, %v417_v8  ;;  %v4457_v15 = vadd.f32 %v3451_v11, %v3119_v30  ;;  %v540_v16 = vpop.f32.mrb[15].mxu1 }
  0xfe   :  { %v4460_v21 = vadd.f32 %v3119_v30, %v540_v16 }
  0xff   :  { %v623_v24 = vpop.f32.mrb[16].mxu0 }
 0x100   :  { %v627_v27 = vadd.f32 %v623_v24, %v143_v19  ;;  %v694_v31 = vpop.f32.mrb[16].mxu1  ;;  %v3462_v35 = vpop.f32.mrb[17].mxu0  ;;  %v29_v24 = vld [vmem:[#allocation3] sm:$0xff] }
 0x101   :  { %v698_v40 = vadd.f32 %v694_v31, %v265_v23  ;;  %v3473_v42 = vpop.f32.mrb[17].mxu1 }
 0x102   :  { %v841_v43 = vmul.f32 0.5, %v627_v27 }
 0x103   :  { %v845_v48 = vmul.f32 0.5, %v698_v40 }
 0x104   :  { %4035 = vtanh.f32 %v841_v43 }
 0x105   :  { %4037 = vtanh.f32 %v845_v48 }
 0x107   :  { %v765_v55 = vpop.f32.mrb[18].mxu0 }
 0x108   :  { %v769_v62 = vadd.f32 %v765_v55, %v388_v50  ;;  %v836_v5 = vpop.f32.mrb[18].mxu1  ;;  %v3484_v60 = vpop.f32.mrb[19].mxu0 }
 0x109   :  { %v840_v0 = vadd.f32 %v836_v5, %v511_v54  ;;  %v3495_v8 = vpop.f32.mrb[19].mxu1 }
 0x10a   :  { %4039 = vtanh.f32 %v769_v62 }
 0x10b   :  { %v850_v61 = vmul.f32 0.5, %v840_v0 }
 0x10d   :  { %4041 = vtanh.f32 %v850_v61 }
 0x10e   :  { %v4036_v4 = vpop.eup %4035 }
 0x10f   :  { %v4038_v11 = vpop.eup %4037  ;;  %v843_v16 = vmul.f32 0.5, %v4036_v4 }
 0x110   :  { %v847_v19 = vmul.f32 0.5, %v4038_v11 }
 0x111   :  { %v844_v23 = vadd.f32 0.5, %v843_v16 }
 0x112   :  { %v848_v27 = vadd.f32 0.5, %v847_v19 }
 0x114   :  { %v4040_v31 = vpop.eup %4039  ;;  %v854_v35 = vmul.f32 %v848_v27, %v29_v24 }
 0x115   :  { %v855_v28 = vmul.f32 %v4040_v31, %v844_v23 }
 0x117   :  { %v856_v30 = vadd.f32 %v855_v28, %v854_v35  ;;  %v4042_v34 = vpop.eup %4041 }
 0x118   :  { %v852_v37 = vmul.f32 0.5, %v4042_v34 }
 0x119   :  { %4043 = vtanh.f32 %v856_v30 }
 0x11a   :  { %v853_v40 = vadd.f32 0.5, %v852_v37 }
 0x123   :  { %v4044_v42 = vpop.eup %4043 }
 0x124   :  { %v4463_v43 = vmul.f32 %v4044_v42, %v853_v40  ;;  %v30_v42 = vld [vmem:[#allocation4] sm:$0xff] }
 0x126   :  { %3505 = vmatmul.mubr.msk.f32.vlgmr.msra.gmra.mrb[20].mxu0 %vm23_vm0, %v4463_v43  ;;  %3516 = vmatmul.mubr.msk.f32.vlgmr.msra.gmra.mrb[20].mxu1 %vm23_vm0, %v4463_v43  ;;  %859 = vst.msk [vmem:[%s4790_s4] sm:$0xff] %vm23_vm0, %v4463_v43 }
 0x127   :  { %3874 = vmatpush3.bf16.msra.mxu0 %v4324_v51  ;;  %3880 = vmatpush3.bf16.msra.mxu1 %v4328_v52 }
 0x128   :  { %3875 = vmatprep.subr.bf16.mxu0 %v4116_v32  ;;  %3881 = vmatprep.subr.bf16.mxu1 %v4116_v32 }
 0x129   :  { %3526 = vmatprep.mubr.msk.f32.mxu0 %vm4117_vm1, %v4115_v3  ;;  %3537 = vmatprep.mubr.msk.f32.mxu1 %vm4117_vm1, %v4115_v3 }
 0x12b   :  { %3877 = vmatpush3.bf16.msra.mxu0 %v4345_v57  ;;  %3883 = vmatpush3.bf16.msra.mxu1 %v4349_v58 }
 0x12c   :  { %3884 = vmatprep.subr.bf16.mxu0 %v4116_v32  ;;  %3890 = vmatprep.subr.bf16.mxu1 %v4116_v32 }
 0x12e   :  { %3527 = vmatmul.mubr.msk.f32.vlgmr.msra.gmra.mrb[22].mxu0 %vm23_vm0, %v4463_v43  ;;  %3538 = vmatmul.mubr.msk.f32.vlgmr.msra.gmra.mrb[22].mxu1 %vm23_vm0, %v4463_v43 }
 0x12f   :  { %3886 = vmatpush3.bf16.msra.mxu0 %v4266_v38  ;;  %3892 = vmatpush3.bf16.msra.mxu1 %v4270_v39 }
 0x130   :  { %3887 = vmatprep.subr.bf16.mxu0 %v4116_v32  ;;  %3893 = vmatprep.subr.bf16.mxu1 %v4116_v32 }
 0x131   :  { %3548 = vmatprep.mubr.msk.f32.mxu0 %vm4117_vm1, %v4115_v3  ;;  %3559 = vmatprep.mubr.msk.f32.mxu1 %vm4117_vm1, %v4115_v3 }
 0x133   :  { %3889 = vmatpush3.bf16.msra.mxu0 %v4289_v44  ;;  %3895 = vmatpush3.bf16.msra.mxu1 %v4293_v45 }
 0x134   :  { %3896 = vmatprep.subr.bf16.mxu0 %v4116_v32  ;;  %3902 = vmatprep.subr.bf16.mxu1 %v4116_v32 }
 0x1f9   :  { %v931_v48 = vpop.f32.mrb[20].mxu0  ;;  %v1002_v50 = vpop.f32.mrb[20].mxu1 }
 0x1fa   :  { %v935_v54 = vadd.f32 %v931_v48, %v4386_v63  ;;  %v1006_v55 = vadd.f32 %v1002_v50, %v4389_v2  ;;  %v3506_v62 = vpop.f32.mrb[21].mxu0  ;;  %v3517_v5 = vpop.f32.mrb[21].mxu1  ;;  %v31_v48 = vld [vmem:[#allocation5] sm:$0xff] }
 0x1fb   :  { %v860_v62 = vmax.f32 %v30_v42, %v4463_v43  ;;  %v861_v5 = vadd.f32 %v4463_v43, %v31_v48 }
 0x1fc   :  { %v1149_v60 = vmul.f32 0.5, %v935_v54  ;;  %v1153_v0 = vmul.f32 0.5, %v1006_v55 }
 0x1fe   :  { %4045 = vtanh.f32 %v1149_v60 }
 0x1ff   :  { %4047 = vtanh.f32 %v1153_v0 }
 0x201   :  { %v1073_v8 = vpop.f32.mrb[22].mxu0  ;;  %v1144_v61 = vpop.f32.mrb[22].mxu1 }
 0x202   :  { %v1077_v4 = vadd.f32 %v1073_v8, %v4433_v33  ;;  %v1148_v11 = vadd.f32 %v1144_v61, %v4435_v36  ;;  %v3528_v16 = vpop.f32.mrb[23].mxu0  ;;  %v3539_v19 = vpop.f32.mrb[23].mxu1 }
 0x204   :  { %4049 = vtanh.f32 %v1077_v4  ;;  %v1158_v23 = vmul.f32 0.5, %v1148_v11 }
 0x206   :  { %4051 = vtanh.f32 %v1158_v23 }
 0x208   :  { %v4046_v24 = vpop.eup %4045 }
 0x209   :  { %v4048_v63 = vpop.eup %4047  ;;  %v1151_v27 = vmul.f32 0.5, %v4046_v24 }
 0x20a   :  { %v1155_v2 = vmul.f32 0.5, %v4048_v63 }
 0x20b   :  { %v1152_v31 = vadd.f32 0.5, %v1151_v27 }
 0x20c   :  { %v1156_v35 = vadd.f32 0.5, %v1155_v2 }
 0x20e   :  { %v4050_v28 = vpop.eup %4049  ;;  %v1162_v34 = vmul.f32 %v1156_v35, %v856_v30 }
 0x20f   :  { %v1163_v37 = vmul.f32 %v4050_v28, %v1152_v31 }
 0x210   :  { %v4052_v33 = vpop.eup %4051 }
 0x211   :  { %v4506_v40 = vadd.f32 %v1163_v37, %v1162_v34  ;;  %v1160_v36 = vmul.f32 0.5, %v4052_v33 }
 0x213   :  { %4053 = vtanh.f32 %v4506_v40  ;;  %v1161_v50 = vadd.f32 0.5, %v1160_v36 }
 0x21d   :  { %v4054_v54 = vpop.eup %4053 }
 0x21e   :  { %v1166_v55 = vmul.f32 %v4054_v54, %v1161_v50 }
 0x220   :  { %1168 = vrot.lane.b32.xlu0 %v1166_v55, %s4119_s27  ;;  %3549 = vmatmul.mubr.msk.f32.vlgmr.msra.gmra.mrb[24].mxu0 %vm23_vm0, %v1166_v55  ;;  %v4513_v30 = vmax.f32 %v860_v62, %v1166_v55  ;;  %v4515_v60 = vadd.f32 %v1166_v55, %v861_v5 }
 0x221   :  { %3560 = vmatmul.mubr.msk.f32.vlgmr.msra.gmra.mrb[24].mxu1 %vm23_vm0, %v1166_v55  ;;  %3898 = vmatpush3.bf16.msra.mxu0 %v4324_v51 }
 0x222   :  { %3904 = vmatpush3.bf16.msra.mxu1 %v4328_v52  ;;  %3899 = vmatprep.subr.bf16.mxu0 %v4116_v32 }
 0x223   :  { %3905 = vmatprep.subr.bf16.mxu1 %v4116_v32  ;;  %3570 = vmatprep.mubr.msk.f32.mxu0 %vm4117_vm1, %v4115_v3 }
 0x224   :  { %3581 = vmatprep.mubr.msk.f32.mxu1 %vm4117_vm1, %v4115_v3 }
 0x225   :  { %3901 = vmatpush3.bf16.msra.mxu0 %v4345_v57 }
 0x226   :  { %3907 = vmatpush3.bf16.msra.mxu1 %v4349_v58  ;;  %3908 = vmatprep.subr.bf16.mxu0 %v4116_v32 }
 0x227   :  { %3914 = vmatprep.subr.bf16.mxu1 %v4116_v32 }
 0x228   :  { %3571 = vmatmul.mubr.msk.f32.vlgmr.msra.gmra.mrb[26].mxu0 %vm23_vm0, %v1166_v55 }
 0x229   :  { %3582 = vmatmul.mubr.msk.f32.vlgmr.msra.gmra.mrb[26].mxu1 %vm23_vm0, %v1166_v55  ;;  %3910 = vmatpush3.bf16.msra.mxu0 %v4266_v38 }
 0x22a   :  { %3916 = vmatpush3.bf16.msra.mxu1 %v4270_v39  ;;  %3911 = vmatprep.subr.bf16.mxu0 %v4116_v32 }
 0x22b   :  { %3917 = vmatprep.subr.bf16.mxu1 %v4116_v32  ;;  %3592 = vmatprep.mubr.msk.f32.mxu0 %vm4117_vm1, %v4115_v3 }
 0x22c   :  { %3603 = vmatprep.mubr.msk.f32.mxu1 %vm4117_vm1, %v4115_v3 }
 0x22d   :  { %3913 = vmatpush3.bf16.msra.mxu0 %v4289_v44 }
 0x22e   :  { %3919 = vmatpush3.bf16.msra.mxu1 %v4293_v45  ;;  %3920 = vmatprep.subr.bf16.mxu0 %v4116_v32 }
 0x22f   :  { %3926 = vmatprep.subr.bf16.mxu1 %v4116_v32 }
 0x292   :  { %v1169_v43 = vpop.permute.xlu0 %1168 }
 0x293   :  { %1172 = vst.msk [vmem:[%s4790_s4] sm:$0xff] %vm1171_vm2, %v1169_v43 }
 0x2f3   :  { %v1243_v0 = vpop.f32.mrb[24].mxu0 }
 0x2f4   :  { %v1247_v8 = vadd.f32 %v1243_v0, %v4395_v9  ;;  %v1314_v61 = vpop.f32.mrb[24].mxu1  ;;  %v3550_v4 = vpop.f32.mrb[25].mxu0 }
 0x2f5   :  { %v1318_v11 = vadd.f32 %v1314_v61, %v4401_v12  ;;  %v3561_v16 = vpop.f32.mrb[25].mxu1 }
 0x2f6   :  { %v1461_v19 = vmul.f32 0.5, %v1247_v8 }
 0x2f7   :  { %v1465_v23 = vmul.f32 0.5, %v1318_v11 }
 0x2f8   :  { %4055 = vtanh.f32 %v1461_v19 }
 0x2f9   :  { %4057 = vtanh.f32 %v1465_v23 }
 0x2fb   :  { %v1385_v24 = vpop.f32.mrb[26].mxu0 }
 0x2fc   :  { %v1389_v63 = vadd.f32 %v1385_v24, %v4439_v46  ;;  %v1456_v27 = vpop.f32.mrb[26].mxu1  ;;  %v3572_v2 = vpop.f32.mrb[27].mxu0 }
 0x2fd   :  { %v1460_v31 = vadd.f32 %v1456_v27, %v4443_v49  ;;  %v3583_v35 = vpop.f32.mrb[27].mxu1 }
 0x2fe   :  { %4059 = vtanh.f32 %v1389_v63 }
 0x2ff   :  { %v1470_v28 = vmul.f32 0.5, %v1460_v31 }
 0x301   :  { %4061 = vtanh.f32 %v1470_v28 }
 0x302   :  { %v4056_v9 = vpop.eup %4055 }
 0x303   :  { %v4058_v34 = vpop.eup %4057  ;;  %v1463_v37 = vmul.f32 0.5, %v4056_v9 }
 0x304   :  { %v1467_v33 = vmul.f32 0.5, %v4058_v34 }
 0x305   :  { %v1464_v12 = vadd.f32 0.5, %v1463_v37 }
 0x306   :  { %v1468_v36 = vadd.f32 0.5, %v1467_v33 }
 0x308   :  { %v4060_v42 = vpop.eup %4059  ;;  %v1474_v48 = vmul.f32 %v1468_v36, %v4506_v40 }
 0x309   :  { %v1475_v50 = vmul.f32 %v4060_v42, %v1464_v12 }
 0x30b   :  { %v4553_v54 = vadd.f32 %v1475_v50, %v1474_v48  ;;  %v4062_v46 = vpop.eup %4061 }
 0x30c   :  { %v1472_v49 = vmul.f32 0.5, %v4062_v46 }
 0x30d   :  { %4063 = vtanh.f32 %v4553_v54 }
 0x30e   :  { %v1473_v55 = vadd.f32 0.5, %v1472_v49 }
 0x317   :  { %v4064_v62 = vpop.eup %4063 }
 0x318   :  { %v4556_v5 = vmul.f32 %v4064_v62, %v1473_v55 }
 0x31a   :  { %1480 = vrot.lane.b32.xlu1 %v4556_v5, %s4120_s30  ;;  %3593 = vmatmul.mubr.msk.f32.vlgmr.msra.gmra.mrb[28].mxu0 %vm23_vm0, %v4556_v5  ;;  %v1485_v40 = vmax.f32 %v4513_v30, %v4556_v5  ;;  %v4566_v43 = vadd.f32 %v4556_v5, %v4515_v60 }
 0x31b   :  { %3604 = vmatmul.mubr.msk.f32.vlgmr.msra.gmra.mrb[28].mxu1 %vm23_vm0, %v4556_v5  ;;  %3922 = vmatpush3.bf16.msra.mxu0 %v4324_v51 }
 0x31c   :  { %3928 = vmatpush3.bf16.msra.mxu1 %v4328_v52  ;;  %3923 = vmatprep.subr.bf16.mxu0 %v4116_v32 }
 0x31d   :  { %3929 = vmatprep.subr.bf16.mxu1 %v4116_v32  ;;  %3614 = vmatprep.mubr.msk.f32.mxu0 %vm4117_vm1, %v4115_v3 }
 0x31e   :  { %3625 = vmatprep.mubr.msk.f32.mxu1 %vm4117_vm1, %v4115_v3 }
 0x31f   :  { %3925 = vmatpush3.bf16.msra.mxu0 %v4345_v57 }
 0x320   :  { %3931 = vmatpush3.bf16.msra.mxu1 %v4349_v58  ;;  %3932 = vmatprep.subr.bf16.mxu0 %v4116_v32 }
 0x321   :  { %3938 = vmatprep.subr.bf16.mxu1 %v4116_v32 }
 0x322   :  { %3615 = vmatmul.mubr.msk.f32.vlgmr.msra.gmra.mrb[30].mxu0 %vm23_vm0, %v4556_v5 }
 0x323   :  { %3626 = vmatmul.mubr.msk.f32.vlgmr.msra.gmra.mrb[30].mxu1 %vm23_vm0, %v4556_v5  ;;  %3934 = vmatpush3.bf16.msra.mxu0 %v4266_v38 }
 0x324   :  { %3940 = vmatpush3.bf16.msra.mxu1 %v4270_v39  ;;  %3935 = vmatprep.subr.bf16.mxu0 %v4116_v32 }
 0x325   :  { %3941 = vmatprep.subr.bf16.mxu1 %v4116_v32  ;;  %3636 = vmatprep.mubr.msk.f32.mxu0 %vm4117_vm1, %v4115_v3 }
 0x326   :  { %3647 = vmatprep.mubr.msk.f32.mxu1 %vm4117_vm1, %v4115_v3 }
 0x327   :  { %3937 = vmatpush3.bf16.msra.mxu0 %v4289_v44 }
 0x328   :  { %3943 = vmatpush3.bf16.msra.mxu1 %v4293_v45  ;;  %3944 = vmatprep.subr.bf16.mxu0 %v4116_v32 }
 0x329   :  { %3950 = vmatprep.subr.bf16.mxu1 %v4116_v32 }
 0x38c   :  { %v1481_v60 = vpop.permute.xlu1 %1480 }
 0x38d   :  { %1484 = vst.msk [vmem:[%s4790_s4] sm:$0xff] %vm1483_vm3, %v1481_v60 }
 0x3ed   :  { %v1555_v0 = vpop.f32.mrb[28].mxu0 }
 0x3ee   :  { %v1559_v8 = vadd.f32 %v1555_v0, %v4392_v6  ;;  %v1626_v61 = vpop.f32.mrb[28].mxu1  ;;  %v3594_v4 = vpop.f32.mrb[29].mxu0 }
 0x3ef   :  { %v1630_v11 = vadd.f32 %v1626_v61, %v4398_v10  ;;  %v3605_v16 = vpop.f32.mrb[29].mxu1 }
 0x3f0   :  { %v1773_v19 = vmul.f32 0.5, %v1559_v8 }
 0x3f1   :  { %v1777_v23 = vmul.f32 0.5, %v1630_v11 }
 0x3f2   :  { %4065 = vtanh.f32 %v1773_v19 }
 0x3f3   :  { %4067 = vtanh.f32 %v1777_v23 }
 0x3f5   :  { %v1697_v24 = vpop.f32.mrb[30].mxu0 }
 0x3f6   :  { %v1701_v63 = vadd.f32 %v1697_v24, %v4437_v41  ;;  %v1768_v27 = vpop.f32.mrb[30].mxu1  ;;  %v3616_v2 = vpop.f32.mrb[31].mxu0 }
 0x3f7   :  { %v1772_v31 = vadd.f32 %v1768_v27, %v4441_v47  ;;  %v3627_v35 = vpop.f32.mrb[31].mxu1 }
 0x3f8   :  { %4069 = vtanh.f32 %v1701_v63 }
 0x3f9   :  { %v1782_v28 = vmul.f32 0.5, %v1772_v31 }
 0x3fb   :  { %4071 = vtanh.f32 %v1782_v28 }
 0x3fc   :  { %v4066_v6 = vpop.eup %4065 }
 0x3fd   :  { %v4068_v9 = vpop.eup %4067  ;;  %v1775_v34 = vmul.f32 0.5, %v4066_v6 }
 0x3fe   :  { %v1779_v37 = vmul.f32 0.5, %v4068_v9 }
 0x3ff   :  { %v1776_v10 = vadd.f32 0.5, %v1775_v34 }
 0x400   :  { %v1780_v33 = vadd.f32 0.5, %v1779_v37 }
 0x402   :  { %v4070_v12 = vpop.eup %4069  ;;  %v1786_v36 = vmul.f32 %v1780_v33, %v4553_v54 }
 0x403   :  { %v1787_v42 = vmul.f32 %v4070_v12, %v1776_v10 }
 0x405   :  { %v1788_v48 = vadd.f32 %v1787_v42, %v1786_v36  ;;  %v4072_v41 = vpop.eup %4071 }
 0x406   :  { %v1784_v50 = vmul.f32 0.5, %v4072_v41 }
 0x407   :  { %4073 = vtanh.f32 %v1788_v48 }
 0x408   :  { %v1785_v46 = vadd.f32 0.5, %v1784_v50 }
 0x411   :  { %v4074_v47 = vpop.eup %4073 }
 0x412   :  { %v4607_v49 = vmul.f32 %v4074_v47, %v1785_v46 }
 0x414   :  { %3637 = vmatmul.mubr.msk.f32.vlgmr.msra.gmra.mrb[32].mxu0 %vm23_vm0, %v4607_v49  ;;  %3648 = vmatmul.mubr.msk.f32.vlgmr.msra.gmra.mrb[32].mxu1 %vm23_vm0, %v4607_v49  ;;  %v4651_v36 = vmax.f32 %v1485_v40, %v4607_v49  ;;  %v1798_v42 = vadd.f32 %v4607_v49, %v4566_v43 }
 0x415   :  { %3946 = vmatpush3.bf16.msra.mxu0 %v4324_v51  ;;  %3952 = vmatpush3.bf16.msra.mxu1 %v4328_v52 }
 0x416   :  { %3947 = vmatprep.subr.bf16.mxu0 %v4116_v32  ;;  %3953 = vmatprep.subr.bf16.mxu1 %v4116_v32 }
 0x417   :  { %3658 = vmatprep.mubr.msk.f32.mxu0 %vm4117_vm1, %v4115_v3  ;;  %3669 = vmatprep.mubr.msk.f32.mxu1 %vm4117_vm1, %v4115_v3 }
 0x419   :  { %3949 = vmatpush3.bf16.msra.mxu0 %v4345_v57  ;;  %3955 = vmatpush3.bf16.msra.mxu1 %v4349_v58 }
 0x41a   :  { %3956 = vmatprep.subr.bf16.mxu0 %v4116_v32  ;;  %3962 = vmatprep.subr.bf16.mxu1 %v4116_v32 }
 0x41c   :  { %3659 = vmatmul.mubr.msk.f32.vlgmr.msra.gmra.mrb[34].mxu0 %vm23_vm0, %v4607_v49  ;;  %3670 = vmatmul.mubr.msk.f32.vlgmr.msra.gmra.mrb[34].mxu1 %vm23_vm0, %v4607_v49 }
 0x41d   :  { %3958 = vmatpush3.bf16.msra.mxu0 %v4266_v38  ;;  %3964 = vmatpush3.bf16.msra.mxu1 %v4270_v39 }
 0x41e   :  { %3959 = vmatprep.subr.bf16.mxu0 %v4116_v32  ;;  %3965 = vmatprep.subr.bf16.mxu1 %v4116_v32 }
 0x41f   :  { %3680 = vmatprep.mubr.msk.f32.mxu0 %vm4117_vm1, %v4115_v3  ;;  %3691 = vmatprep.mubr.msk.f32.mxu1 %vm4117_vm1, %v4115_v3 }
 0x421   :  { %3961 = vmatpush3.bf16.msra.mxu0 %v4289_v44  ;;  %3967 = vmatpush3.bf16.msra.mxu1 %v4293_v45 }
 0x422   :  { %3968 = vmatprep.subr.bf16.mxu0 %v4116_v32  ;;  %3974 = vmatprep.subr.bf16.mxu1 %v4116_v32 }
 0x4e7   :  { %v1867_v54 = vpop.f32.mrb[32].mxu0  ;;  %v1938_v55 = vpop.f32.mrb[32].mxu1 }
 0x4e8   :  { %v1871_v62 = vadd.f32 %v1867_v54, %v4407_v17  ;;  %v1942_v60 = vadd.f32 %v1938_v55, %v4413_v20  ;;  %v3638_v0 = vpop.f32.mrb[33].mxu0  ;;  %v3649_v8 = vpop.f32.mrb[33].mxu1 }
 0x4ea   :  { %v2085_v61 = vmul.f32 0.5, %v1871_v62  ;;  %v2089_v4 = vmul.f32 0.5, %v1942_v60 }
 0x4ec   :  { %4075 = vtanh.f32 %v2085_v61 }
 0x4ed   :  { %4077 = vtanh.f32 %v2089_v4 }
 0x4ef   :  { %v2009_v11 = vpop.f32.mrb[34].mxu0  ;;  %v2080_v16 = vpop.f32.mrb[34].mxu1 }
 0x4f0   :  { %v2013_v19 = vadd.f32 %v2009_v11, %v4447_v56  ;;  %v2084_v23 = vadd.f32 %v2080_v16, %v4451_v1  ;;  %v3660_v24 = vpop.f32.mrb[35].mxu0  ;;  %v3671_v63 = vpop.f32.mrb[35].mxu1 }
 0x4f2   :  { %4079 = vtanh.f32 %v2013_v19  ;;  %v2094_v27 = vmul.f32 0.5, %v2084_v23 }
 0x4f4   :  { %4081 = vtanh.f32 %v2094_v27 }
 0x4f6   :  { %v4076_v2 = vpop.eup %4075 }
 0x4f7   :  { %v4078_v17 = vpop.eup %4077  ;;  %v2087_v31 = vmul.f32 0.5, %v4076_v2 }
 0x4f8   :  { %v2091_v20 = vmul.f32 0.5, %v4078_v17 }
 0x4f9   :  { %v2088_v35 = vadd.f32 0.5, %v2087_v31 }
 0x4fa   :  { %v2092_v28 = vadd.f32 0.5, %v2091_v20 }
 0x4fc   :  { %v4080_v6 = vpop.eup %4079  ;;  %v2098_v9 = vmul.f32 %v2092_v28, %v1788_v48 }
 0x4fd   :  { %v2099_v34 = vmul.f32 %v4080_v6, %v2088_v35 }
 0x4fe   :  { %v4082_v10 = vpop.eup %4081 }
 0x4ff   :  { %v2100_v37 = vadd.f32 %v2099_v34, %v2098_v9  ;;  %v2096_v56 = vmul.f32 0.5, %v4082_v10 }
 0x501   :  { %4083 = vtanh.f32 %v2100_v37  ;;  %v2097_v33 = vadd.f32 0.5, %v2096_v56 }
 0x50b   :  { %v4084_v1 = vpop.eup %4083 }
 0x50c   :  { %v4645_v12 = vmul.f32 %v4084_v1, %v2097_v33 }
 0x50e   :  { %2103 = vst.msk [vmem:[%s4790_s4 + $0x8] sm:$0xff] %vm23_vm0, %v4645_v12  ;;  %3681 = vmatmul.mubr.msk.f32.vlgmr.msra.gmra.mrb[36].mxu0 %vm23_vm0, %v4645_v12  ;;  %3692 = vmatmul.mubr.msk.f32.vlgmr.msra.gmra.mrb[36].mxu1 %vm23_vm0, %v4645_v12  ;;  %v2104_v30 = vmax.f32 %v4651_v36, %v4645_v12  ;;  %v2105_v5 = vadd.f32 %v4645_v12, %v1798_v42 }
 0x50f   :  { %3970 = vmatpush3.bf16.msra.mxu0 %v4324_v51  ;;  %3976 = vmatpush3.bf16.msra.mxu1 %v4328_v52 }
 0x510   :  { %3971 = vmatprep.subr.bf16.mxu0 %v4116_v32  ;;  %3977 = vmatprep.subr.bf16.mxu1 %v4116_v32 }
 0x511   :  { %3702 = vmatprep.mubr.msk.f32.mxu0 %vm4117_vm1, %v4115_v3  ;;  %3713 = vmatprep.mubr.msk.f32.mxu1 %vm4117_vm1, %v4115_v3 }
 0x513   :  { %3973 = vmatpush3.bf16.msra.mxu0 %v4345_v57  ;;  %3979 = vmatpush3.bf16.msra.mxu1 %v4349_v58 }
 0x514   :  { %3980 = vmatprep.subr.bf16.mxu0 %v4116_v32  ;;  %3986 = vmatprep.subr.bf16.mxu1 %v4116_v32 }
 0x516   :  { %3703 = vmatmul.mubr.msk.f32.vlgmr.msra.gmra.mrb[38].mxu0 %vm23_vm0, %v4645_v12  ;;  %3714 = vmatmul.mubr.msk.f32.vlgmr.msra.gmra.mrb[38].mxu1 %vm23_vm0, %v4645_v12 }
 0x517   :  { %3982 = vmatpush3.bf16.msra.mxu0 %v4266_v38  ;;  %3988 = vmatpush3.bf16.msra.mxu1 %v4270_v39 }
 0x518   :  { %3983 = vmatprep.subr.bf16.mxu0 %v4116_v32  ;;  %3989 = vmatprep.subr.bf16.mxu1 %v4116_v32 }
 0x519   :  { %3724 = vmatprep.mubr.msk.f32.mxu0 %vm4117_vm1, %v4115_v3  ;;  %3735 = vmatprep.mubr.msk.f32.mxu1 %vm4117_vm1, %v4115_v3 }
 0x51b   :  { %3985 = vmatpush3.bf16.msra.mxu0 %v4289_v44  ;;  %3991 = vmatpush3.bf16.msra.mxu1 %v4293_v45 }
 0x51c   :  { %3992 = vmatprep.subr.bf16.mxu0 %v4116_v32  ;;  %3998 = vmatprep.subr.bf16.mxu1 %v4116_v32 }
 0x5e1   :  { %v2175_v40 = vpop.f32.mrb[36].mxu0  ;;  %v2246_v43 = vpop.f32.mrb[36].mxu1 }
 0x5e2   :  { %v2179_v48 = vadd.f32 %v2175_v40, %v4404_v14  ;;  %v2250_v41 = vadd.f32 %v2246_v43, %v4410_v18  ;;  %v3682_v50 = vpop.f32.mrb[37].mxu0  ;;  %v3693_v46 = vpop.f32.mrb[37].mxu1 }
 0x5e4   :  { %v2393_v47 = vmul.f32 0.5, %v2179_v48  ;;  %v2397_v54 = vmul.f32 0.5, %v2250_v41 }
 0x5e6   :  { %4085 = vtanh.f32 %v2393_v47 }
 0x5e7   :  { %4087 = vtanh.f32 %v2397_v54 }
 0x5e9   :  { %v2317_v55 = vpop.f32.mrb[38].mxu0  ;;  %v2388_v62 = vpop.f32.mrb[38].mxu1 }
 0x5ea   :  { %v2321_v60 = vadd.f32 %v2317_v55, %v4445_v53  ;;  %v2392_v0 = vadd.f32 %v2388_v62, %v4449_v59  ;;  %v3704_v8 = vpop.f32.mrb[39].mxu0  ;;  %v3715_v61 = vpop.f32.mrb[39].mxu1 }
 0x5ec   :  { %4089 = vtanh.f32 %v2321_v60  ;;  %v2402_v4 = vmul.f32 0.5, %v2392_v0 }
 0x5ee   :  { %4091 = vtanh.f32 %v2402_v4 }
 0x5f0   :  { %v4086_v11 = vpop.eup %4085 }
 0x5f1   :  { %v4088_v14 = vpop.eup %4087  ;;  %v2395_v16 = vmul.f32 0.5, %v4086_v11 }
 0x5f2   :  { %v2399_v18 = vmul.f32 0.5, %v4088_v14 }
 0x5f3   :  { %v2396_v19 = vadd.f32 0.5, %v2395_v16 }
 0x5f4   :  { %v2400_v23 = vadd.f32 0.5, %v2399_v18 }
 0x5f6   :  { %v4090_v24 = vpop.eup %4089  ;;  %v2406_v63 = vmul.f32 %v2400_v23, %v2100_v37 }
 0x5f7   :  { %v2407_v27 = vmul.f32 %v4090_v24, %v2396_v19 }
 0x5f8   :  { %v4092_v17 = vpop.eup %4091 }
 0x5f9   :  { %v2408_v2 = vadd.f32 %v2407_v27, %v2406_v63  ;;  %v2404_v53 = vmul.f32 0.5, %v4092_v17 }
 0x5fb   :  { %4093 = vtanh.f32 %v2408_v2  ;;  %v2405_v31 = vadd.f32 0.5, %v2404_v53 }
 0x605   :  { %v4094_v59 = vpop.eup %4093 }
 0x606   :  { %v2410_v20 = vmul.f32 %v4094_v59, %v2405_v31 }
 0x608   :  { %2412 = vrot.lane.b32.xlu0 %v2410_v20, %s4119_s27  ;;  %3725 = vmatmul.mubr.msk.f32.vlgmr.msra.gmra.mrb[40].mxu0 %vm23_vm0, %v2410_v20  ;;  %v4701_v35 = vmax.f32 %v2104_v30, %v2410_v20  ;;  %v4703_v28 = vadd.f32 %v2410_v20, %v2105_v5 }
 0x609   :  { %3736 = vmatmul.mubr.msk.f32.vlgmr.msra.gmra.mrb[40].mxu1 %vm23_vm0, %v2410_v20  ;;  %3994 = vmatpush3.bf16.msra.mxu0 %v4324_v51 }
 0x60a   :  { %4000 = vmatpush3.bf16.msra.mxu1 %v4328_v52  ;;  %3995 = vmatprep.subr.bf16.mxu0 %v4116_v32 }
 0x60b   :  { %4001 = vmatprep.subr.bf16.mxu1 %v4116_v32  ;;  %3746 = vmatprep.mubr.msk.f32.mxu0 %vm4117_vm1, %v4115_v3 }
 0x60c   :  { %3757 = vmatprep.mubr.msk.f32.mxu1 %vm4117_vm1, %v4115_v3 }
 0x60d   :  { %3997 = vmatpush3.bf16.msra.mxu0 %v4345_v57 }
 0x60e   :  { %4003 = vmatpush3.bf16.msra.mxu1 %v4349_v58  ;;  %4004 = vmatprep.subr.bf16.mxu0 %v4116_v32 }
 0x60f   :  { %4010 = vmatprep.subr.bf16.mxu1 %v4116_v32 }
 0x610   :  { %3747 = vmatmul.mubr.msk.f32.vlgmr.msra.gmra.mrb[42].mxu0 %vm23_vm0, %v2410_v20 }
 0x611   :  { %3758 = vmatmul.mubr.msk.f32.vlgmr.msra.gmra.mrb[42].mxu1 %vm23_vm0, %v2410_v20  ;;  %4006 = vmatpush3.bf16.msra.mxu0 %v4266_v38 }
 0x612   :  { %4012 = vmatpush3.bf16.msra.mxu1 %v4270_v39  ;;  %4007 = vmatprep.subr.bf16.mxu0 %v4116_v32 }
 0x613   :  { %4013 = vmatprep.subr.bf16.mxu1 %v4116_v32  ;;  %3768 = vmatprep.mubr.msk.f32.mxu0 %vm4117_vm1, %v4115_v3 }
 0x614   :  { %3779 = vmatprep.mubr.msk.f32.mxu1 %vm4117_vm1, %v4115_v3 }
 0x615   :  { %4009 = vmatpush3.bf16.msra.mxu0 %v4289_v44 }
 0x616   :  { %4015 = vmatpush3.bf16.msra.mxu1 %v4293_v45  ;;  %4016 = vmatprep.subr.bf16.mxu0 %v4116_v32 }
 0x617   :  { %4022 = vmatprep.subr.bf16.mxu1 %v4116_v32 }
 0x67a   :  { %v2413_v38 = vpop.permute.xlu0 %2412 }
 0x67b   :  { %2415 = vst.msk [vmem:[%s4790_s4 + $0x8] sm:$0xff] %vm1171_vm2, %v2413_v38 }
 0x6db   :  { %v2486_v39 = vpop.f32.mrb[40].mxu0 }
 0x6dc   :  { %v2490_v6 = vadd.f32 %v2486_v39, %v4419_v25  ;;  %v2557_v9 = vpop.f32.mrb[40].mxu1  ;;  %v3726_v34 = vpop.f32.mrb[41].mxu0 }
 0x6dd   :  { %v2561_v37 = vadd.f32 %v2557_v9, %v4428_v29  ;;  %v3737_v44 = vpop.f32.mrb[41].mxu1 }
 0x6de   :  { %v2704_v10 = vmul.f32 0.5, %v2490_v6 }
 0x6df   :  { %v2708_v45 = vmul.f32 0.5, %v2561_v37 }
 0x6e0   :  { %4095 = vtanh.f32 %v2704_v10 }
 0x6e1   :  { %4097 = vtanh.f32 %v2708_v45 }
 0x6e3   :  { %v2628_v56 = vpop.f32.mrb[42].mxu0 }
 0x6e4   :  { %v2632_v33 = vadd.f32 %v2628_v56, %v4455_v13  ;;  %v2699_v1 = vpop.f32.mrb[42].mxu1  ;;  %v3748_v12 = vpop.f32.mrb[43].mxu0 }
 0x6e5   :  { %v2703_v36 = vadd.f32 %v2699_v1, %v4460_v21  ;;  %v3759_v42 = vpop.f32.mrb[43].mxu1 }
 0x6e6   :  { %4099 = vtanh.f32 %v2632_v33 }
 0x6e7   :  { %v2713_v30 = vmul.f32 0.5, %v2703_v36 }
 0x6e9   :  { %4101 = vtanh.f32 %v2713_v30 }
 0x6ea   :  { %v4096_v25 = vpop.eup %4095 }
 0x6eb   :  { %v4098_v5 = vpop.eup %4097  ;;  %v2706_v40 = vmul.f32 0.5, %v4096_v25 }
 0x6ec   :  { %v2710_v43 = vmul.f32 0.5, %v4098_v5 }
 0x6ed   :  { %v2707_v29 = vadd.f32 0.5, %v2706_v40 }
 0x6ee   :  { %v2711_v48 = vadd.f32 0.5, %v2710_v43 }
 0x6f0   :  { %v4100_v41 = vpop.eup %4099  ;;  %v2717_v50 = vmul.f32 %v2711_v48, %v2408_v2 }
 0x6f1   :  { %v2718_v46 = vmul.f32 %v4100_v41, %v2707_v29 }
 0x6f3   :  { %v2719_v47 = vadd.f32 %v2718_v46, %v2717_v50  ;;  %v4102_v13 = vpop.eup %4101 }
 0x6f4   :  { %v2715_v54 = vmul.f32 0.5, %v4102_v13 }
 0x6f5   :  { %4103 = vtanh.f32 %v2719_v47 }
 0x6f6   :  { %v2716_v55 = vadd.f32 0.5, %v2715_v54 }
 0x6ff   :  { %v4104_v62 = vpop.eup %4103 }
 0x700   :  { %v2721_v21 = vmul.f32 %v4104_v62, %v2716_v55 }
 0x702   :  { %2723 = vrot.lane.b32.xlu0 %v2721_v21, %s4120_s30  ;;  %3769 = vmatmul.mubr.msk.f32.vlgmr.msra.gmra.mrb[44].mxu0 %vm23_vm0, %v2721_v21  ;;  %v2727_v60 = vmax.f32 %v4701_v35, %v2721_v21  ;;  %v2728_v0 = vadd.f32 %v2721_v21, %v4703_v28 }
 0x703   :  { %3780 = vmatmul.mubr.msk.f32.vlgmr.msra.gmra.mrb[44].mxu1 %vm23_vm0, %v2721_v21  ;;  %4018 = vmatpush3.bf16.msra.mxu0 %v4324_v51 }
 0x704   :  { %4024 = vmatpush3.bf16.msra.mxu1 %v4328_v52  ;;  %4019 = vmatprep.subr.bf16.mxu0 %v4116_v32 }
 0x705   :  { %4025 = vmatprep.subr.bf16.mxu1 %v4116_v32  ;;  %3790 = vmatprep.mubr.msk.f32.mxu0 %vm4117_vm1, %v4115_v3 }
 0x706   :  { %1792 = vrot.lane.b32.xlu0 %v4607_v49, %s4121_s11  ;;  %3801 = vmatprep.mubr.msk.f32.mxu1 %vm4117_vm1, %v4115_v3 }
 0x707   :  { %4021 = vmatpush3.bf16.msra.mxu0 %v4345_v57 }
 0x708   :  { %4027 = vmatpush3.bf16.msra.mxu1 %v4349_v58 }
 0x70a   :  { %3791 = vmatmul.mubr.msk.f32.vlgmr.msra.gmra.mrb[46].mxu0 %vm23_vm0, %v2721_v21 }
 0x70b   :  { %3802 = vmatmul.mubr.msk.f32.vlgmr.msra.gmra.mrb[46].mxu1 %vm23_vm0, %v2721_v21 }
 0x774   :  { %v2724_v51 = vpop.permute.xlu0 %2723 }
 0x775   :  { %2726 = vst.msk [vmem:[%s4790_s4 + $0x8] sm:$0xff] %vm1483_vm3, %v2724_v51 }
 0x778   :  { %v1793_v32 = vpop.permute.xlu0 %1792 }
 0x779   :  { %1796 = vst.msk [vmem:[%s4790_s4] sm:$0xff] %vm1795_vm4, %v1793_v32 }
 0x7d5   :  { %v2797_v3 = vpop.f32.mrb[44].mxu0 }
 0x7d6   :  { %v2801_v52 = vadd.f32 %v2797_v3, %v4416_v22  ;;  %v2868_v57 = vpop.f32.mrb[44].mxu1  ;;  %v3770_v58 = vpop.f32.mrb[45].mxu0 }
 0x7d7   :  { %v2872_v49 = vadd.f32 %v2868_v57, %v4422_v26  ;;  %v3781_v8 = vpop.f32.mrb[45].mxu1 }
 0x7d8   :  { %v3015_v61 = vmul.f32 0.5, %v2801_v52 }
 0x7d9   :  { %v3019_v4 = vmul.f32 0.5, %v2872_v49 }
 0x7da   :  { %4105 = vtanh.f32 %v3015_v61 }
 0x7db   :  { %4107 = vtanh.f32 %v3019_v4 }
 0x7dd   :  { %v2939_v11 = vpop.f32.mrb[46].mxu0 }
 0x7de   :  { %v2943_v14 = vadd.f32 %v2939_v11, %v4453_v7  ;;  %v3010_v16 = vpop.f32.mrb[46].mxu1  ;;  %v3792_v18 = vpop.f32.mrb[47].mxu0 }
 0x7df   :  { %v3014_v19 = vadd.f32 %v3010_v16, %v4457_v15  ;;  %v3803_v23 = vpop.f32.mrb[47].mxu1 }
 0x7e0   :  { %4109 = vtanh.f32 %v2943_v14 }
 0x7e1   :  { %v3024_v24 = vmul.f32 0.5, %v3014_v19 }
 0x7e3   :  { %4111 = vtanh.f32 %v3024_v24 }
 0x7e4   :  { %v4106_v22 = vpop.eup %4105 }
 0x7e5   :  { %v4108_v63 = vpop.eup %4107  ;;  %v3017_v27 = vmul.f32 0.5, %v4106_v22 }
 0x7e6   :  { %v3021_v2 = vmul.f32 0.5, %v4108_v63 }
 0x7e7   :  { %v3018_v26 = vadd.f32 0.5, %v3017_v27 }
 0x7e8   :  { %v3022_v17 = vadd.f32 0.5, %v3021_v2 }
 0x7ea   :  { %v4110_v53 = vpop.eup %4109  ;;  %v3028_v31 = vmul.f32 %v3022_v17, %v2719_v47 }
 0x7eb   :  { %v3029_v59 = vmul.f32 %v4110_v53, %v3018_v26 }
 0x7ed   :  { %v3030_v20 = vadd.f32 %v3029_v59, %v3028_v31  ;;  %v4112_v7 = vpop.eup %4111 }
 0x7ee   :  { %v3026_v35 = vmul.f32 0.5, %v4112_v7 }
 0x7ef   :  { %4113 = vtanh.f32 %v3030_v20  ;;  %3041 = vst.msk [vmem:[#allocation3] sm:$0xff] %vm23_vm0, %v3030_v20 }
 0x7f0   :  { %v3027_v15 = vadd.f32 0.5, %v3026_v35 }
 0x7f9   :  { %v4114_v28 = vpop.eup %4113 }
 0x7fa   :  { %v3032_v38 = vmul.f32 %v4114_v28, %v3027_v15 }
 0x7fc   :  { %3040 = vst.msk [vmem:[#allocation2] sm:$0xff] %vm23_vm0, %v3032_v38  ;;  %v3038_v39 = vmax.f32 %v2727_v60, %v3032_v38  ;;  %v3039_v6 = vadd.f32 %v3032_v38, %v2728_v0 }
 0x7fe   :  { %3049 = vrot.lane.b32.xlu1 %v3038_v39, %s4119_s27  ;;  %3042 = vst.msk [vmem:[#allocation4] sm:$0xff] %vm23_vm0, %v3038_v39  ;;  %3043 = vst.msk [vmem:[#allocation5] sm:$0xff] %vm23_vm0, %v3039_v6  ;;  %v3047_v9 = vmul.f32 0.125, %v3039_v6 }
 0x802   :  { %3053 = vrot.lane.b32.xlu1 %v3047_v9, %s4120_s30 }
 0x806   :  { %3034 = vrot.lane.b32.xlu1 %v3032_v38, %s4121_s11 }
 0x870   :  { %v3050_v34 = vpop.permute.xlu1 %3049 }
 0x871   :  { %v3056_v37 = vsel %vm23_vm0, %v3032_v38, %v3050_v34 }
 0x874   :  { %v3054_v44 = vpop.permute.xlu1 %3053 }
 0x875   :  { %v3058_v10 = vsel %vm3057_vm5, %v3056_v37, %v3054_v44 }
 0x876   :  { %3060 = vst.msk [vmem:[%s4791_s5] sm:$0xff] %vm3059_vm6, %v3058_v10 }
 0x878   :  { %v3035_v45 = vpop.permute.xlu1 %3034 }
 0x879   :  { %3037 = vst.msk [vmem:[%s4790_s4 + $0x8] sm:$0xff] %vm1795_vm4, %v3035_v45 }

</bundles_post_ra>
